<compile_context>
chip_gen: v6e
topology: v6e:2x2x1
jax: 0.10.0
libtpu: 0.0.40
codegen_flags: <defaults>
</compile_context>

<pallas_src>
import jax
import jax.numpy as jnp
from jax.experimental import pallas as pl
from jax.experimental.pallas import tpu as pltpu

NEG_SLOPE = 0.01                       # nn.LeakyReLU default negative_slope


def _vmem_capacity_bytes():
    """Physical VMEM of the current TPU generation (fallback: v7x's 64 MiB)."""
    try:
        info = pltpu.get_tpu_info()
        cap = int(getattr(info, "vmem_capacity_bytes", 0))
        if cap > 0:
            return cap
    except Exception:
        pass
    return 64 * 1024 * 1024


def _choose_tile_i(N, D, max_hidden, node_bytes, budget_bytes):
    """Row-tile for the pairwise 'i' axis: divides N, multiple of 8 (or == N),
    sized so per-step VMEM (activations + i-scaled pipeline buffers) fits budget."""
    per_row = N * (D * node_bytes              # x_ij slab in mxu dtype
                   + (D + 2 * max_hidden) * 4  # f32 casts / two live layer activations
                   + 10 * 4                    # f32 epilogue slabs (sim/dsim/e0/e1/...)
                   + 2 * 2 * 4 * 2)            # edge-in + edge-out blocks, double-buffered
    per_row += D * node_bytes * 2              # xi row block, double-buffered
    cap = max(8, budget_bytes // max(per_row, 1))
    for t in (1024, 512, 256, 128, 64, 32, 16, 8):
        if t <= min(cap, N) and N % t == 0:
            return t
    # NOTE: if N % 8 != 0 the (TI,N,D)->(TI*N,D) reshape is no longer guaranteed
    # layout-preserving (Mosaic may insert a relayout copy) -- correct but slower.
    return N   # small / odd N: single full-row tile (full-dim block is always legal)


def _edge_update_kernel(xi_ref, xall_ref, edge_ref,
                        w0, b0, w1, b1, w2, b2, w3, b3, w4, b4,
                        out_ref):
    xi = xi_ref[0]                      # (TI, D) mxu dtype -- this step's row tile
    xa = xall_ref[0]                    # (N,  D) mxu dtype -- all nodes (the j axis)
    TI, D = xi.shape
    N = xa.shape[0]
    mxu_dtype = w0.dtype                # bf16 fast path or f32 exact path

    # pairwise |x_i - x_j| for this row tile, formed directly in the MXU operand
    # dtype -> (TI*N, D).  The reshape only merges the leading (sublane-major)
    # dims; with N % 8 == 0 the minor-dim (8,128) tiling is preserved.
    x_ij = jnp.abs(xi[:, None, :] - xa[None, :, :]).reshape(TI * N, D)

    # sim_network: 4 x (1x1 conv [BN folded] + LeakyReLU).  MXU matmuls with
    # (optionally bf16) operands and f32 accumulation; activations stay f32.
    act = x_ij
    for w_ref, b_ref in ((w0, b0), (w1, b1), (w2, b2), (w3, b3)):
        z = jnp.dot(act.astype(mxu_dtype), w_ref[...],
                    preferred_element_type=jnp.float32) + b_ref[...]
        act = jnp.maximum(z, NEG_SLOPE * z)          # LeakyReLU: vmul + vmax

    # conv_out has out_channels == 1: a (., 1) MXU matmul would be 1/128 lane
    # utilized, so do a VPU multiply + lane reduce instead.  w4 is (1, C_last).
    # Bias-add and sigmoid happen AFTER the (TI, N) reshape so the EUP/VPU work
    # on lane-dense data instead of a (TI*N, 1) column (~128x fewer vreg ops).
    logit = jnp.sum(act * w4[...], axis=-1, keepdims=True).reshape(TI, N)
    sim = jax.nn.sigmoid(logit + b4[...])            # (TI, N)
    dsim = 1.0 - sim

    # identity / diagonal mask for this row tile (global row index).
    row = jax.lax.broadcasted_iota(jnp.int32, (TI, N), 0) + pl.program_id(1) * TI
    col = jax.lax.broadcasted_iota(jnp.int32, (TI, N), 1)
    eye = (row == col).astype(jnp.float32)           # (TI, N)
    diag_mask = 1.0 - eye

    # Edge normalization per channel (no (2,N,N) concatenations, no all-zero
    # "force" channel, one shared reciprocal for the channel-sum denominator).
    e0 = edge_ref[0, 0] * diag_mask                  # (TI, N)
    e1 = edge_ref[0, 1] * diag_mask
    ms0 = jnp.sum(e0, axis=-1, keepdims=True)        # (TI, 1)
    ms1 = jnp.sum(e1, axis=-1, keepdims=True)

    p0 = sim * e0
    p1 = dsim * e1
    # F.normalize(p=1, dim=-1): divide by L1 norm clamped at 1e-12, then * merge_sum
    s0 = ms0 / jnp.maximum(jnp.sum(jnp.abs(p0), axis=-1, keepdims=True), 1e-12)
    s1 = ms1 / jnp.maximum(jnp.sum(jnp.abs(p1), axis=-1, keepdims=True), 1e-12)
    e0 = p0 * s0 + eye + 1e-6          # force_edge_feat: channel 0 = I, channel 1 = 0
    e1 = p1 * s1 + 1e-6
    inv_den = 1.0 / (e0 + e1)          # single per-element reciprocal, shared
    out_ref[0, 0] = e0 * inv_den
    out_ref[0, 1] = e1 * inv_den


def object_edge_update(node_feat, edge_feat, params, *,
                       mxu_dtype=jnp.bfloat16, tile_i=None):
    """ObjectEdgeUpdateNetwork forward.

    node_feat: (B, N, D), edge_feat: (B, 2, N, N).
    params: folded (1x1 conv + eval-mode BN) weights from make_params().
    mxu_dtype: dtype of the |x_i-x_j| tensor and MXU matmul operands (bf16 on
      v6e/v7x, f32 for an exact-precision path); accumulation and all other
      element-wise math stay in f32.
    """
    B, N, D = node_feat.shape
    assert edge_feat.shape == (B, 2, N, N)
    node_feat = node_feat.astype(mxu_dtype)     # ship nodes in the MXU operand dtype
    edge_feat = edge_feat.astype(jnp.float32)

    w0, b0, w1, b1, w2, b2, w3, b3, w4, b4 = params
    kparams = [
        w0.astype(mxu_dtype), b0.astype(jnp.float32),
        w1.astype(mxu_dtype), b1.astype(jnp.float32),
        w2.astype(mxu_dtype), b2.astype(jnp.float32),
        w3.astype(mxu_dtype), b3.astype(jnp.float32),
        w4.astype(jnp.float32).reshape(1, -1),   # conv_out weight as a lane row-vector
        b4.astype(jnp.float32).reshape(1, 1),
    ]

    # Generation-aware VMEM sizing: ~96 MiB scoped limit on v5e/v6e (128 MiB
    # physical), ~48 MiB on v7x (64 MiB physical).
    vmem_cap = _vmem_capacity_bytes()
    vmem_limit = min((vmem_cap * 3) // 4, 100 * 1024 * 1024)

    if tile_i is None:
        max_hidden = max(w.shape[1] for w in (w0, w1, w2, w3))
        node_bytes = jnp.dtype(mxu_dtype).itemsize
        # Fixed (tile-independent) VMEM: double-buffered (1,N,D) xall block
        # + double-buffered weights.
        fixed = 2 * N * D * node_bytes
        fixed += 2 * sum(int(p.size) * p.dtype.itemsize for p in kparams)
        budget = int(max(vmem_limit - fixed, 0) * 0.6)   # headroom for scratch/pipeline
        tile_i = _choose_tile_i(N, D, max_hidden, node_bytes, budget)
        # v7x dual-TensorCore guard: make sure there are >= 2 grid steps of
        # "parallel" work so one core never idles (harmless on v5e/v6e).
        if B * (N // tile_i) < 2:
            half = tile_i // 2
            if half >= 8 and half % 8 == 0 and N % half == 0:
                tile_i = half
    assert N % tile_i == 0, (N, tile_i)
    num_i = N // tile_i

    weight_specs = [
        pl.BlockSpec(p.shape, lambda b, i, nd=p.ndim: (0,) * nd) for p in kparams
    ]
    in_specs = [
        pl.BlockSpec((1, tile_i, D), lambda b, i: (b, i, 0)),     # node rows (i-tile)
        pl.BlockSpec((1, N, D), lambda b, i: (b, 0, 0)),          # all nodes (j axis)
        pl.BlockSpec((1, 2, tile_i, N), lambda b, i: (b, 0, i, 0)),
    ] + weight_specs
    out_specs = pl.BlockSpec((1, 2, tile_i, N), lambda b, i: (b, 0, i, 0))

    return pl.pallas_call(
        _edge_update_kernel,
        out_shape=jax.ShapeDtypeStruct((B, 2, N, N), jnp.float32),
        grid=(B, num_i),
        in_specs=in_specs,
        out_specs=out_specs,
        compiler_params=pltpu.CompilerParams(
            dimension_semantics=("parallel", "parallel"),
            vmem_limit_bytes=int(vmem_limit)),
    )(node_feat, node_feat, edge_feat, *kparams)    # node passed twice: i-tile + full-N


def make_params(key, in_features, num_features, ratio=(2, 2, 1, 1)):
    """Deterministic parameters; Conv2d(1x1, bias=False)+BatchNorm2d folded to (W, b).

    BatchNorm is applied in eval mode with deterministic (non-trivial) running
    stats / affine params, folded into the preceding conv.
    """
    feats = [num_features * r for r in ratio]
    dims = [in_features] + feats
    params = []
    keys = jax.random.split(key, len(feats) + 1)
    for l in range(len(feats)):
        cin, cout = dims[l], dims[l + 1]
        w = jax.random.normal(keys[l], (cin, cout), jnp.float32) / jnp.sqrt(float(cin))
        idx = jnp.arange(cout, dtype=jnp.float32)
        gamma = 1.0 + 0.05 * idx / cout
        beta = 0.01 * idx
        running_mean = 0.02 * idx
        running_var = 1.0 + 0.1 * idx / cout
        s = gamma / jnp.sqrt(running_var + 1e-5)
        params.append(w * s[None, :])                      # folded weight (cin, cout)
        params.append((beta - running_mean * s)[None, :])  # folded bias   (1, cout)
    # conv_out: 1x1 conv with bias, out_channels = 1
    w_out = jax.random.normal(keys[-1], (feats[-1], 1), jnp.float32) / jnp.sqrt(float(feats[-1]))
    b_out = jnp.full((1, 1), 0.1, jnp.float32)
    params += [w_out, b_out]
    return params


def reference(node_feat, edge_feat, params, mxu_dtype=jnp.float32):
    """Pure-JAX mirror of the PyTorch forward (same folded params).

    mxu_dtype reproduces the kernel's optional bf16 path (|x_i-x_j| and matmul
    operands in bf16; accumulation and all other element-wise math in f32).
    """
    B, N, D = node_feat.shape
    x = node_feat.astype(mxu_dtype)
    x_ij = jnp.abs(x[:, :, None, :] - x[:, None, :, :])    # (B,N,N,D) in mxu_dtype
    h = x_ij.reshape(B * N * N, D)
    for l in range(4):
        h = jnp.dot(h.astype(mxu_dtype), params[2 * l].astype(mxu_dtype),
                    preferred_element_type=jnp.float32) + params[2 * l + 1]
        h = jnp.where(h >= 0, h, NEG_SLOPE * h)
    logit = h @ params[8] + params[9]
    sim = jax.nn.sigmoid(logit).reshape(B, 1, N, N)     # symmetric in (i,j)
    dsim = 1.0 - sim
    eye = jnp.eye(N, dtype=jnp.float32)
    e = edge_feat.astype(jnp.float32) * (1.0 - eye)
    merge_sum = jnp.sum(e, -1, keepdims=True)
    prod = jnp.concatenate([sim, dsim], axis=1) * e
    l1 = jnp.maximum(jnp.sum(jnp.abs(prod), -1, keepdims=True), 1e-12)
    e = prod / l1 * merge_sum
    force = jnp.stack([eye, jnp.zeros_like(eye)], 0)[None]
    e = e + force + 1e-6
    return e / jnp.sum(e, axis=1, keepdims=True)


if __name__ == "__main__":
    B, N = 2, 8
    in_features, num_features = 16, 8   # feature list -> [16, 16, 8, 8]

    key = jax.random.PRNGKey(0)
    k_node, k_edge, k_par = jax.random.split(key, 3)
    node_feat = jax.random.normal(k_node, (B, N, in_features), jnp.float32)
    edge_feat = jax.random.uniform(k_edge, (B, 2, N, N), jnp.float32)
    params = make_params(k_par, in_features, num_features)

    # Exact-precision path (f32 MXU operands) vs the f32 reference (PyTorch numerics).
    out_f32 = object_edge_update(node_feat, edge_feat, params, mxu_dtype=jnp.float32)
    jax.block_until_ready(out_f32)
    ref_f32 = reference(node_feat, edge_feat, params, mxu_dtype=jnp.float32)
    assert out_f32.shape == (B, 2, N, N)
    err_f32 = float(jnp.max(jnp.abs(out_f32 - ref_f32)))
    assert jnp.allclose(out_f32, ref_f32, atol=1e-4, rtol=1e-4), err_f32

    # Fast path (bf16 |xi-xj| + MXU operands, f32 accumulation / element-wise)
    # vs the matching bf16 reference.
    out_bf16 = object_edge_update(node_feat, edge_feat, params, mxu_dtype=jnp.bfloat16)
    jax.block_until_ready(out_bf16)
    ref_bf16 = reference(node_feat, edge_feat, params, mxu_dtype=jnp.bfloat16)
    err_bf16 = float(jnp.max(jnp.abs(out_bf16 - ref_bf16)))
    assert jnp.allclose(out_bf16, ref_bf16, atol=2e-3, rtol=2e-3), err_bf16

    print("KERNEL_OK")
</pallas_src>

<mosaic_0001>
module attributes {stable_mosaic.version = 11 : i64} {
  func.func @_edge_update_kernel(%arg0: i32, %arg1: i32, %arg2: memref<1x8x16xf32, #tpu.memory_space<vmem>>, %arg3: memref<1x8x16xf32, #tpu.memory_space<vmem>>, %arg4: memref<1x2x8x8xf32, #tpu.memory_space<vmem>>, %arg5: memref<16x16xf32, #tpu.memory_space<vmem>>, %arg6: memref<1x16xf32, #tpu.memory_space<vmem>>, %arg7: memref<16x16xf32, #tpu.memory_space<vmem>>, %arg8: memref<1x16xf32, #tpu.memory_space<vmem>>, %arg9: memref<16x8xf32, #tpu.memory_space<vmem>>, %arg10: memref<1x8xf32, #tpu.memory_space<vmem>>, %arg11: memref<8x8xf32, #tpu.memory_space<vmem>>, %arg12: memref<1x8xf32, #tpu.memory_space<vmem>>, %arg13: memref<1x8xf32, #tpu.memory_space<vmem>>, %arg14: memref<1x1xf32, #tpu.memory_space<vmem>>, %arg15: memref<1x2x8x8xf32, #tpu.memory_space<vmem>>) attributes {dimension_semantics = [#tpu.dimension_semantics<parallel>, #tpu.dimension_semantics<parallel>], iteration_bounds = array<i64: 2, 1>, scalar_prefetch = 0 : i64, scratch_operands = 0 : i64, tpu.core_type = #tpu.core_type<tc>, window_params = [{transform_indices = @transform_0, window_bounds = array<i64: 1, 8, 16>}, {transform_indices = @transform_1, window_bounds = array<i64: 1, 8, 16>}, {transform_indices = @transform_2, window_bounds = array<i64: 1, 2, 8, 8>}, {pipeline_mode = #tpu.pipeline_mode<synchronous>, transform_indices = @transform_3, window_bounds = array<i64: 16, 16>}, {pipeline_mode = #tpu.pipeline_mode<synchronous>, transform_indices = @transform_4, window_bounds = array<i64: 1, 16>}, {pipeline_mode = #tpu.pipeline_mode<synchronous>, transform_indices = @transform_5, window_bounds = array<i64: 16, 16>}, {pipeline_mode = #tpu.pipeline_mode<synchronous>, transform_indices = @transform_6, window_bounds = array<i64: 1, 16>}, {pipeline_mode = #tpu.pipeline_mode<synchronous>, transform_indices = @transform_7, window_bounds = array<i64: 16, 8>}, {pipeline_mode = #tpu.pipeline_mode<synchronous>, transform_indices = @transform_8, window_bounds = array<i64: 1, 8>}, {pipeline_mode = #tpu.pipeline_mode<synchronous>, transform_indices = @transform_9, window_bounds = array<i64: 8, 8>}, {pipeline_mode = #tpu.pipeline_mode<synchronous>, transform_indices = @transform_10, window_bounds = array<i64: 1, 8>}, {pipeline_mode = #tpu.pipeline_mode<synchronous>, transform_indices = @transform_11, window_bounds = array<i64: 1, 8>}, {pipeline_mode = #tpu.pipeline_mode<synchronous>, transform_indices = @transform_12, window_bounds = array<i64: 1, 1>}, {transform_indices = @transform_13, window_bounds = array<i64: 1, 2, 8, 8>}]} {
    %c0 = arith.constant 0 : index
    %c0_0 = arith.constant 0 : index
    %c0_1 = arith.constant 0 : index
    %0 = vector.load %arg2[%c0, %c0_0, %c0_1] : memref<1x8x16xf32, #tpu.memory_space<vmem>>, vector<1x8x16xf32>
    %1 = vector.shape_cast %0 : vector<1x8x16xf32> to vector<8x16xf32>
    %c0_2 = arith.constant 0 : index
    %c0_3 = arith.constant 0 : index
    %c0_4 = arith.constant 0 : index
    %2 = vector.load %arg3[%c0_2, %c0_3, %c0_4] : memref<1x8x16xf32, #tpu.memory_space<vmem>>, vector<1x8x16xf32>
    %3 = vector.shape_cast %2 : vector<1x8x16xf32> to vector<8x16xf32>
    %4 = vector.shape_cast %1 : vector<8x16xf32> to vector<8x1x16xf32>
    %5 = vector.shape_cast %3 : vector<8x16xf32> to vector<1x8x16xf32>
    %6 = vector.broadcast %4 : vector<8x1x16xf32> to vector<8x8x16xf32>
    %7 = vector.broadcast %5 : vector<1x8x16xf32> to vector<8x8x16xf32>
    %8 = arith.subf %6, %7 : vector<8x8x16xf32>
    %9 = math.absf %8 : vector<8x8x16xf32>
    %10 = vector.shape_cast %9 : vector<8x8x16xf32> to vector<64x16xf32>
    %c0_5 = arith.constant 0 : index
    %c0_6 = arith.constant 0 : index
    %11 = vector.load %arg5[%c0_5, %c0_6] : memref<16x16xf32, #tpu.memory_space<vmem>>, vector<16x16xf32>
    %cst = arith.constant dense<0.000000e+00> : vector<64x16xf32>
    %12 = tpu.matmul %10, %11, %cst {dimension_numbers = #tpu.dot_dimension_numbers<[1], [0], [0], [1], [0, 0, 1, 1], [], []>} : vector<64x16xf32>, vector<16x16xf32>, vector<64x16xf32> -> vector<64x16xf32>
    %c0_7 = arith.constant 0 : index
    %c0_8 = arith.constant 0 : index
    %13 = vector.load %arg6[%c0_7, %c0_8] : memref<1x16xf32, #tpu.memory_space<vmem>>, vector<1x16xf32>
    %14 = vector.broadcast %13 : vector<1x16xf32> to vector<64x16xf32>
    %15 = arith.addf %12, %14 : vector<64x16xf32>
    %cst_9 = arith.constant 0.00999999977 : f32
    %16 = vector.broadcast %cst_9 : f32 to vector<64x16xf32>
    %17 = arith.mulf %16, %15 : vector<64x16xf32>
    %18 = arith.maximumf %15, %17 : vector<64x16xf32>
    %c0_10 = arith.constant 0 : index
    %c0_11 = arith.constant 0 : index
    %19 = vector.load %arg7[%c0_10, %c0_11] : memref<16x16xf32, #tpu.memory_space<vmem>>, vector<16x16xf32>
    %cst_12 = arith.constant dense<0.000000e+00> : vector<64x16xf32>
    %20 = tpu.matmul %18, %19, %cst_12 {dimension_numbers = #tpu.dot_dimension_numbers<[1], [0], [0], [1], [0, 0, 1, 1], [], []>} : vector<64x16xf32>, vector<16x16xf32>, vector<64x16xf32> -> vector<64x16xf32>
    %c0_13 = arith.constant 0 : index
    %c0_14 = arith.constant 0 : index
    %21 = vector.load %arg8[%c0_13, %c0_14] : memref<1x16xf32, #tpu.memory_space<vmem>>, vector<1x16xf32>
    %22 = vector.broadcast %21 : vector<1x16xf32> to vector<64x16xf32>
    %23 = arith.addf %20, %22 : vector<64x16xf32>
    %cst_15 = arith.constant 0.00999999977 : f32
    %24 = vector.broadcast %cst_15 : f32 to vector<64x16xf32>
    %25 = arith.mulf %24, %23 : vector<64x16xf32>
    %26 = arith.maximumf %23, %25 : vector<64x16xf32>
    %c0_16 = arith.constant 0 : index
    %c0_17 = arith.constant 0 : index
    %27 = vector.load %arg9[%c0_16, %c0_17] : memref<16x8xf32, #tpu.memory_space<vmem>>, vector<16x8xf32>
    %cst_18 = arith.constant dense<0.000000e+00> : vector<64x8xf32>
    %28 = tpu.matmul %26, %27, %cst_18 {dimension_numbers = #tpu.dot_dimension_numbers<[1], [0], [0], [1], [0, 0, 1, 1], [], []>} : vector<64x16xf32>, vector<16x8xf32>, vector<64x8xf32> -> vector<64x8xf32>
    %c0_19 = arith.constant 0 : index
    %c0_20 = arith.constant 0 : index
    %29 = vector.load %arg10[%c0_19, %c0_20] : memref<1x8xf32, #tpu.memory_space<vmem>>, vector<1x8xf32>
    %30 = vector.broadcast %29 : vector<1x8xf32> to vector<64x8xf32>
    %31 = arith.addf %28, %30 : vector<64x8xf32>
    %cst_21 = arith.constant 0.00999999977 : f32
    %32 = vector.broadcast %cst_21 : f32 to vector<64x8xf32>
    %33 = arith.mulf %32, %31 : vector<64x8xf32>
    %34 = arith.maximumf %31, %33 : vector<64x8xf32>
    %c0_22 = arith.constant 0 : index
    %c0_23 = arith.constant 0 : index
    %35 = vector.load %arg11[%c0_22, %c0_23] : memref<8x8xf32, #tpu.memory_space<vmem>>, vector<8x8xf32>
    %cst_24 = arith.constant dense<0.000000e+00> : vector<64x8xf32>
    %36 = tpu.matmul %34, %35, %cst_24 {dimension_numbers = #tpu.dot_dimension_numbers<[1], [0], [0], [1], [0, 0, 1, 1], [], []>} : vector<64x8xf32>, vector<8x8xf32>, vector<64x8xf32> -> vector<64x8xf32>
    %c0_25 = arith.constant 0 : index
    %c0_26 = arith.constant 0 : index
    %37 = vector.load %arg12[%c0_25, %c0_26] : memref<1x8xf32, #tpu.memory_space<vmem>>, vector<1x8xf32>
    %38 = vector.broadcast %37 : vector<1x8xf32> to vector<64x8xf32>
    %39 = arith.addf %36, %38 : vector<64x8xf32>
    %cst_27 = arith.constant 0.00999999977 : f32
    %40 = vector.broadcast %cst_27 : f32 to vector<64x8xf32>
    %41 = arith.mulf %40, %39 : vector<64x8xf32>
    %42 = arith.maximumf %39, %41 : vector<64x8xf32>
    %c0_28 = arith.constant 0 : index
    %c0_29 = arith.constant 0 : index
    %43 = vector.load %arg13[%c0_28, %c0_29] : memref<1x8xf32, #tpu.memory_space<vmem>>, vector<1x8xf32>
    %44 = vector.broadcast %43 : vector<1x8xf32> to vector<64x8xf32>
    %45 = arith.mulf %42, %44 : vector<64x8xf32>
    %cst_30 = arith.constant dense<0.000000e+00> : vector<64xf32>
    %46 = vector.multi_reduction <add>, %45, %cst_30 [1] : vector<64x8xf32> to vector<64xf32>
    %47 = vector.shape_cast %46 : vector<64xf32> to vector<64x1xf32>
    %48 = vector.shape_cast %47 : vector<64x1xf32> to vector<8x8xf32>
    %c0_31 = arith.constant 0 : index
    %c0_32 = arith.constant 0 : index
    %49 = vector.load %arg14[%c0_31, %c0_32] : memref<1x1xf32, #tpu.memory_space<vmem>>, vector<1x1xf32>
    %50 = vector.broadcast %49 : vector<1x1xf32> to vector<8x8xf32>
    %51 = arith.addf %48, %50 : vector<8x8xf32>
    %52 = arith.negf %51 : vector<8x8xf32>
    %53 = math.exp %52 : vector<8x8xf32>
    %cst_33 = arith.constant 1.000000e+00 : f32
    %54 = vector.broadcast %cst_33 : f32 to vector<8x8xf32>
    %55 = arith.addf %54, %53 : vector<8x8xf32>
    %56 = arith.divf %54, %55 : vector<8x8xf32>
    %cst_34 = arith.constant 1.000000e+00 : f32
    %57 = vector.broadcast %cst_34 : f32 to vector<8x8xf32>
    %58 = arith.subf %57, %56 : vector<8x8xf32>
    %59 = tpu.iota {dimensions = array<i32: 0>} : vector<8x8xi32>
    %c8_i32 = arith.constant 8 : i32
    %60 = arith.muli %arg1, %c8_i32 : i32
    %61 = vector.broadcast %60 : i32 to vector<8x8xi32>
    %62 = arith.addi %59, %61 : vector<8x8xi32>
    %63 = tpu.iota {dimensions = array<i32: 1>} : vector<8x8xi32>
    %64 = arith.cmpi eq, %62, %63 : vector<8x8xi32>
    %65 = arith.extui %64 : vector<8x8xi1> to vector<8x8xi32>
    %66 = arith.sitofp %65 : vector<8x8xi32> to vector<8x8xf32>
    %cst_35 = arith.constant 1.000000e+00 : f32
    %67 = vector.broadcast %cst_35 : f32 to vector<8x8xf32>
    %68 = arith.subf %67, %66 : vector<8x8xf32>
    %c0_36 = arith.constant 0 : index
    %c0_37 = arith.constant 0 : index
    %c0_38 = arith.constant 0 : index
    %c0_39 = arith.constant 0 : index
    %69 = vector.load %arg4[%c0_36, %c0_37, %c0_38, %c0_39] : memref<1x2x8x8xf32, #tpu.memory_space<vmem>>, vector<1x1x8x8xf32>
    %70 = vector.shape_cast %69 : vector<1x1x8x8xf32> to vector<8x8xf32>
    %71 = arith.mulf %70, %68 : vector<8x8xf32>
    %c0_40 = arith.constant 0 : index
    %c1 = arith.constant 1 : index
    %c0_41 = arith.constant 0 : index
    %c0_42 = arith.constant 0 : index
    %72 = vector.load %arg4[%c0_40, %c1, %c0_41, %c0_42] : memref<1x2x8x8xf32, #tpu.memory_space<vmem>>, vector<1x1x8x8xf32>
    %73 = vector.shape_cast %72 : vector<1x1x8x8xf32> to vector<8x8xf32>
    %74 = arith.mulf %73, %68 : vector<8x8xf32>
    %cst_43 = arith.constant dense<0.000000e+00> : vector<8xf32>
    %75 = vector.multi_reduction <add>, %71, %cst_43 [1] : vector<8x8xf32> to vector<8xf32>
    %76 = vector.shape_cast %75 : vector<8xf32> to vector<8x1xf32>
    %cst_44 = arith.constant dense<0.000000e+00> : vector<8xf32>
    %77 = vector.multi_reduction <add>, %74, %cst_44 [1] : vector<8x8xf32> to vector<8xf32>
    %78 = vector.shape_cast %77 : vector<8xf32> to vector<8x1xf32>
    %79 = arith.mulf %56, %71 : vector<8x8xf32>
    %80 = arith.mulf %58, %74 : vector<8x8xf32>
    %81 = math.absf %79 : vector<8x8xf32>
    %cst_45 = arith.constant dense<0.000000e+00> : vector<8xf32>
    %82 = vector.multi_reduction <add>, %81, %cst_45 [1] : vector<8x8xf32> to vector<8xf32>
    %83 = vector.shape_cast %82 : vector<8xf32> to vector<8x1xf32>
    %cst_46 = arith.constant 9.99999996E-13 : f32
    %84 = vector.broadcast %cst_46 : f32 to vector<8x1xf32>
    %85 = arith.maximumf %83, %84 : vector<8x1xf32>
    %86 = arith.divf %76, %85 : vector<8x1xf32>
    %87 = math.absf %80 : vector<8x8xf32>
    %cst_47 = arith.constant dense<0.000000e+00> : vector<8xf32>
    %88 = vector.multi_reduction <add>, %87, %cst_47 [1] : vector<8x8xf32> to vector<8xf32>
    %89 = vector.shape_cast %88 : vector<8xf32> to vector<8x1xf32>
    %cst_48 = arith.constant 9.99999996E-13 : f32
    %90 = vector.broadcast %cst_48 : f32 to vector<8x1xf32>
    %91 = arith.maximumf %89, %90 : vector<8x1xf32>
    %92 = arith.divf %78, %91 : vector<8x1xf32>
    %93 = vector.broadcast %86 : vector<8x1xf32> to vector<8x8xf32>
    %94 = arith.mulf %79, %93 : vector<8x8xf32>
    %95 = arith.addf %94, %66 : vector<8x8xf32>
    %cst_49 = arith.constant 9.99999997E-7 : f32
    %96 = vector.broadcast %cst_49 : f32 to vector<8x8xf32>
    %97 = arith.addf %95, %96 : vector<8x8xf32>
    %98 = vector.broadcast %92 : vector<8x1xf32> to vector<8x8xf32>
    %99 = arith.mulf %80, %98 : vector<8x8xf32>
    %cst_50 = arith.constant 9.99999997E-7 : f32
    %100 = vector.broadcast %cst_50 : f32 to vector<8x8xf32>
    %101 = arith.addf %99, %100 : vector<8x8xf32>
    %102 = arith.addf %97, %101 : vector<8x8xf32>
    %cst_51 = arith.constant 1.000000e+00 : f32
    %103 = vector.broadcast %cst_51 : f32 to vector<8x8xf32>
    %104 = arith.divf %103, %102 : vector<8x8xf32>
    %105 = arith.mulf %97, %104 : vector<8x8xf32>
    %c0_52 = arith.constant 0 : index
    %c0_53 = arith.constant 0 : index
    %c0_54 = arith.constant 0 : index
    %c0_55 = arith.constant 0 : index
    %106 = vector.load %arg15[%c0_52, %c0_53, %c0_54, %c0_55] : memref<1x2x8x8xf32, #tpu.memory_space<vmem>>, vector<1x1x8x8xf32>
    %107 = vector.shape_cast %106 : vector<1x1x8x8xf32> to vector<8x8xf32>
    %108 = vector.shape_cast %105 : vector<8x8xf32> to vector<1x1x8x8xf32>
    tpu.vector_store %arg15[%c0_52, %c0_53, %c0_54, %c0_55], %108 {strides = array<i32>} : memref<1x2x8x8xf32, #tpu.memory_space<vmem>>, vector<1x1x8x8xf32>,
    %109 = arith.mulf %101, %104 : vector<8x8xf32>
    %c0_56 = arith.constant 0 : index
    %c1_57 = arith.constant 1 : index
    %c0_58 = arith.constant 0 : index
    %c0_59 = arith.constant 0 : index
    %110 = vector.load %arg15[%c0_56, %c1_57, %c0_58, %c0_59] : memref<1x2x8x8xf32, #tpu.memory_space<vmem>>, vector<1x1x8x8xf32>
    %111 = vector.shape_cast %110 : vector<1x1x8x8xf32> to vector<8x8xf32>
    %112 = vector.shape_cast %109 : vector<8x8xf32> to vector<1x1x8x8xf32>
    tpu.vector_store %arg15[%c0_56, %c1_57, %c0_58, %c0_59], %112 {strides = array<i32>} : memref<1x2x8x8xf32, #tpu.memory_space<vmem>>, vector<1x1x8x8xf32>,
    return
  }
  func.func @transform_0(%arg0: i32, %arg1: i32) -> (i32, i32, i32) {
    %c0_i32 = arith.constant 0 : i32
    %c0_i32_0 = arith.constant 0 : i32
    return %arg0, %arg1, %c0_i32 : i32, i32, i32
  }
  func.func @transform_1(%arg0: i32, %arg1: i32) -> (i32, i32, i32) {
    %c0_i32 = arith.constant 0 : i32
    %c0_i32_0 = arith.constant 0 : i32
    %c0_i32_1 = arith.constant 0 : i32
    return %arg0, %c0_i32, %c0_i32_0 : i32, i32, i32
  }
  func.func @transform_2(%arg0: i32, %arg1: i32) -> (i32, i32, i32, i32) {
    %c0_i32 = arith.constant 0 : i32
    %c0_i32_0 = arith.constant 0 : i32
    %c0_i32_1 = arith.constant 0 : i32
    return %arg0, %c0_i32, %arg1, %c0_i32_0 : i32, i32, i32, i32
  }
  func.func @transform_3(%arg0: i32, %arg1: i32) -> (i32, i32) {
    %c0_i32 = arith.constant 0 : i32
    %c0_i32_0 = arith.constant 0 : i32
    %c0_i32_1 = arith.constant 0 : i32
    return %c0_i32, %c0_i32_0 : i32, i32
  }
  func.func @transform_4(%arg0: i32, %arg1: i32) -> (i32, i32) {
    %c0_i32 = arith.constant 0 : i32
    %c0_i32_0 = arith.constant 0 : i32
    %c0_i32_1 = arith.constant 0 : i32
    return %c0_i32, %c0_i32_0 : i32, i32
  }
  func.func @transform_5(%arg0: i32, %arg1: i32) -> (i32, i32) {
    %c0_i32 = arith.constant 0 : i32
    %c0_i32_0 = arith.constant 0 : i32
    %c0_i32_1 = arith.constant 0 : i32
    return %c0_i32, %c0_i32_0 : i32, i32
  }
  func.func @transform_6(%arg0: i32, %arg1: i32) -> (i32, i32) {
    %c0_i32 = arith.constant 0 : i32
    %c0_i32_0 = arith.constant 0 : i32
    %c0_i32_1 = arith.constant 0 : i32
    return %c0_i32, %c0_i32_0 : i32, i32
  }
  func.func @transform_7(%arg0: i32, %arg1: i32) -> (i32, i32) {
    %c0_i32 = arith.constant 0 : i32
    %c0_i32_0 = arith.constant 0 : i32
    %c0_i32_1 = arith.constant 0 : i32
    return %c0_i32, %c0_i32_0 : i32, i32
  }
  func.func @transform_8(%arg0: i32, %arg1: i32) -> (i32, i32) {
    %c0_i32 = arith.constant 0 : i32
    %c0_i32_0 = arith.constant 0 : i32
    %c0_i32_1 = arith.constant 0 : i32
    return %c0_i32, %c0_i32_0 : i32, i32
  }
  func.func @transform_9(%arg0: i32, %arg1: i32) -> (i32, i32) {
    %c0_i32 = arith.constant 0 : i32
    %c0_i32_0 = arith.constant 0 : i32
    %c0_i32_1 = arith.constant 0 : i32
    return %c0_i32, %c0_i32_0 : i32, i32
  }
  func.func @transform_10(%arg0: i32, %arg1: i32) -> (i32, i32) {
    %c0_i32 = arith.constant 0 : i32
    %c0_i32_0 = arith.constant 0 : i32
    %c0_i32_1 = arith.constant 0 : i32
    return %c0_i32, %c0_i32_0 : i32, i32
  }
  func.func @transform_11(%arg0: i32, %arg1: i32) -> (i32, i32) {
    %c0_i32 = arith.constant 0 : i32
    %c0_i32_0 = arith.constant 0 : i32
    %c0_i32_1 = arith.constant 0 : i32
    return %c0_i32, %c0_i32_0 : i32, i32
  }
  func.func @transform_12(%arg0: i32, %arg1: i32) -> (i32, i32) {
    %c0_i32 = arith.constant 0 : i32
    %c0_i32_0 = arith.constant 0 : i32
    %c0_i32_1 = arith.constant 0 : i32
    return %c0_i32, %c0_i32_0 : i32, i32
  }
  func.func @transform_13(%arg0: i32, %arg1: i32) -> (i32, i32, i32, i32) {
    %c0_i32 = arith.constant 0 : i32
    %c0_i32_0 = arith.constant 0 : i32
    %c0_i32_1 = arith.constant 0 : i32
    return %arg0, %c0_i32, %arg1, %c0_i32_0 : i32, i32, i32, i32
  }
}

</mosaic_0001>

<bundles_post_ra>
// kernel: tpu_custom_call.1
= control target key start
LH: loop header
LB: loop body
LE: loop exit
PB: predicated region body
PF: predicated region fallthrough
CT: control target
= control target key end

     0   :  { %s3602_s0 = inlined_call_operand.vmem [shape: f32[2,8,16], index: 0, kind: input, shape index: {}]   ;;  %s3603_s1 = inlined_call_operand.hbm [shape: f32[2,8,16], index: 1, kind: input, shape index: {}]   ;;  %s3604_s2 = inlined_call_operand.hbm [shape: f32[2,2,8,8], index: 2, kind: input, shape index: {}]   ;;  %s3605_s3 = inlined_call_operand.hbm [shape: f32[16,16], index: 3, kind: input, shape index: {}]   ;;  %s3606_s4 = inlined_call_operand.hbm [shape: f32[1,16], index: 4, kind: input, shape index: {}]   ;;  %s3607_s5 = inlined_call_operand.vmem [shape: f32[16,16], index: 5, kind: input, shape index: {}]   ;;  %s3608_s6 = inlined_call_operand.hbm [shape: f32[1,16], index: 6, kind: input, shape index: {}]   ;;  %s3609_s7 = inlined_call_operand.vmem [shape: f32[16,8], index: 7, kind: input, shape index: {}]   ;;  %s3610_s8 = inlined_call_operand.hbm [shape: f32[1,8], index: 8, kind: input, shape index: {}]   ;;  %s3611_s9 = inlined_call_operand.vmem [shape: f32[8,8], index: 9, kind: input, shape index: {}]   ;;  %s3612_s10 = inlined_call_operand.vmem [shape: f32[1,8], index: 10, kind: input, shape index: {}]   ;;  %s3613_s11 = inlined_call_operand.vmem [shape: f32[1,8], index: 11, kind: input, shape index: {}]   ;;  %s3614_s12 = inlined_call_operand.<no memory space> [shape: f32[1,1], index: 12, kind: input, shape index: {}]   ;;  %s3615_s13 = inlined_call_operand.hbm [shape: f32[2,2,8,8], index: 13, kind: output, shape index: {}]  }
   0x1   :  { %3622 = sst [smem:[#allocation25_spill]] %s3603_s1  ;;  %v18_v0 = vstv %s3614_s12 }
   0x2   :  { %3623 = sst [smem:[#allocation26_spill]] %s3605_s3  ;;  %19 = vst [vmem:[#allocation2] sm:$0x1] %v18_v0 }
   0x3   :  { %3624 = sst [smem:[#allocation27_spill]] %s3606_s4 }
   0x4   :  { %3625 = sst [smem:[#allocation28_spill]] %s3608_s6 }
   0x5   :  { %3626 = sst [smem:[#allocation29_spill]] %s3610_s8 }
   0x6   :  { %3627 = sst [smem:[#allocation30_spill]] %s3613_s11 }
   0x7   :  { %3628 = sst [smem:[#allocation31_spill]] %s3615_s13 }
   0x8   :  { %20 = vsyncpa [#allocation4], 0 }
   0x9   :  { %22 = vsyncpa [#allocation4 + $0x1], 0 }
   0xa   :  { %23 = vsyncpa [#allocation7], 0 }
   0xb   :  { %25 = vsyncpa [#allocation7 + $0x1], 0 }
   0xc   :  { %26 = vsyncpa [#allocation10], 0 }
   0xd   :  { %27 = vsyncpa [#allocation13], 0 }
   0xe   :  { %28 = vsyncpa [#allocation5], 0 }
   0xf   :  { %30 = vsyncpa [#allocation5 + $0x1], 0  ;;  %s3024_s27 = smov 0   ;;  %s3026_s28 = smov 0  }
  0x10   :  { %s3028_s29 = smov 0   ;;  %s3030_s30 = smov 0  }
  0x11   :  { %s3032_s14 = smov 0   ;;  %s3034_s12 = smov 0  }
  0x12 LB: > { %3629 = sst [smem:[#allocation21_spill]] %s2923_s29  ;;  %s3055_s15 = sadd.s32 4294967295, %s2935_s12   ;;  %s2935_s12 = sphi %s3034_s12, %s36_s12   ;;  %s2931_s14 = sphi %s3032_s14, %s3657_s14   ;;  %s2927_s30 = sphi %s3030_s30, %s3656_s30   ;;  %s2923_s29 = sphi %s3028_s29, %s3652_s29   ;;  %s2919_s28 = sphi %s3026_s28, %s3655_s28   ;;  %s2915_s27 = sphi %s3024_s27, %s3654_s27  }
  0x13   : > { %p2332_p0 = scmp.ge.s32.totalorder %s2935_s12, 1  ;;  %p97_p1 = scmp.eq.s32.totalorder %s3055_s15, 0 }
  0x14   : > { %p373_p2 = scmp.lt.s32.totalorder %s2935_s12, 3  ;;  %s2937_s17 = smov [#allocation8]  }
  0x15   : > { %s385_s18 = sshll.u32 %s2937_s17, 4  ;;  %s2938_s20 = smov [#allocation9]   ;;  %s386_s18 = int_to_ptr.vmem [resolvable:$true] %s385_s18 }
  0x16   : > { %p3060_p3 = pnand %p2332_p0, %p373_p2  ;;  %s399_s21 = sshll.u32 %s2938_s20, 4  ;;  %s400_s21 = int_to_ptr.vmem [resolvable:$true] %s399_s21 }
  0x17   : > { %s2939_s22 = smov [#allocation11]   ;;  %s2690_s24 = scalar_lea.vmem %s386_s18, 256 }
  0x18   : > { %p2531_p4 = pneg %p3060_p3  ;;  %s413_s23 = sshll.u32 %s2939_s22, 4  ;;  %s414_s23 = int_to_ptr.vmem [resolvable:$true] %s413_s23 }
  0x19   : > { %p2691_p8 = scmp.ne.s32.totalorder %s386_s18, %s2690_s24  ;;  %p2698_p11 = scmp.lt.s32.totalorder %s386_s18, %s386_s18 }
  0x1a   : > { %p3069_p6 = pnand %p2531_p4, %p97_p1  ;;  %p2699_p12 = scmp.lt.s32.totalorder %s2690_s24, %s2690_s24 }
  0x1c   : > { %p2681_p7 = pneg %p3069_p6  ;;  %p2700_p13 = por %p2699_p12, %p2698_p11 }
  0x1e   : > { %p2693_p9 = pnand %p2691_p8, %p2681_p7 }
  0x20   : > { %p2694_p10 = pneg %p2693_p9 }
  0x22   : > { %p2701_p0 = pnand %p2700_p13, %p2694_p10 }
  0x24   : > { %2704 = shalt.err (!%p2701_p0)
}
  0x25   : > { %s3617_s25 = smov 128   ;;  %s3618_s26 = smov 8  }
  0x26   : > { %s3632_s3 = sld [smem:[#allocation26_spill]]  ;;  %s2716_s22 = scalar_lea.vmem %s400_s21, 16 }
  0x27   : > { %p2717_p2 = scmp.ne.s32.totalorder %s400_s21, %s2716_s22  ;;  %s2723_s24 = scalar_lea.vmem %s400_s21, 32 }
  0x28   : > { %p2724_p9 = scmp.lt.s32.totalorder %s400_s21, %s400_s21  ;;  %p2725_p10 = scmp.lt.s32.totalorder %s2723_s24, %s2716_s22 }
  0x29   : > { %p2719_p4 = pnand %p2717_p2, %p2681_p7 }
  0x2a   : > { %p2726_p11 = por %p2725_p10, %p2724_p9 }
  0x2b   : > { %p2720_p8 = pneg %p2719_p4 }
  0x2c   : > { %2534 = dma.hbm_to_vmem [thread:$0]  (!%p3069_p6), %s3632_s3, 256, %s386_s18, [#allocation7], %s3617_s25, %s3617_s25, %s3618_s26  }
  0x2d   : > { %p2727_p12 = pnand %p2726_p11, %p2720_p8 }
  0x2f   : > { %2730 = shalt.err (!%p2727_p12)
}
  0x30   : > { %s3633_s4 = sld [smem:[#allocation27_spill]]  ;;  %s2742_s18 = scalar_lea.vmem %s414_s23, 16 }
  0x31   : > { %p2743_p13 = scmp.ne.s32.totalorder %s414_s23, %s2742_s18  ;;  %s2749_s17 = scalar_lea.vmem %s414_s23, 32 }
  0x32   : > { %p2750_p4 = scmp.lt.s32.totalorder %s414_s23, %s414_s23  ;;  %p2751_p5 = scmp.lt.s32.totalorder %s2749_s17, %s2742_s18 }
  0x33   : > { %p2745_p0 = pnand %p2743_p13, %p2681_p7 }
  0x34   : > { %p2752_p9 = por %p2751_p5, %p2750_p4 }
  0x35   : > { %p2746_p2 = pneg %p2745_p0 }
  0x36   : > { %2537 = dma.hbm_to_vmem [thread:$0]  (!%p3069_p6), %s3633_s4, 16, %s400_s21, [#allocation10]  }
  0x37   : > { %p2753_p8 = pnand %p2752_p9, %p2746_p2 }
  0x39   : > { %2756 = shalt.err (!%p2753_p8)
}
  0x3a   : > { %s3634_s6 = sld [smem:[#allocation28_spill]]  ;;  %s2942_s11 = smov [#allocation12]  }
  0x3b   : > { %s427_s13 = sshll.u32 %s2942_s11, 4  ;;  %s428_s13 = int_to_ptr.vmem [resolvable:$true] %s427_s13 }
  0x3c   : > { %s2768_s21 = scalar_lea.vmem %s428_s13, 16  ;;  %s2775_s24 = scalar_lea.vmem %s428_s13, 32 }
  0x3d   : > { %p2769_p10 = scmp.ne.s32.totalorder %s428_s13, %s2768_s21  ;;  %p2776_p5 = scmp.lt.s32.totalorder %s428_s13, %s428_s13 }
  0x3e   : > { %p2777_p13 = scmp.lt.s32.totalorder %s2775_s24, %s2768_s21 }
  0x3f   : > { %p2771_p11 = pnand %p2769_p10, %p2681_p7 }
  0x40   : > { %2540 = dma.hbm_to_vmem [thread:$0]  (!%p3069_p6), %s3634_s6, 16, %s414_s23, [#allocation10]  }
  0x41   : > { %p2772_p12 = pneg %p2771_p11  ;;  %p2778_p0 = por %p2777_p13, %p2776_p5 }
  0x43   : > { %p2779_p2 = pnand %p2778_p0, %p2772_p12 }
  0x45   : > { %2782 = shalt.err (!%p2779_p2)
}
  0x46   : > { %s3635_s8 = sld [smem:[#allocation29_spill]]  ;;  %s2331_s23 = sadd.s32 4294967294, %s2935_s12  }
  0x47   : > { %s48_s20 = sadd.s32 1, %s2931_s14  ;;  %s83_s19 = sadd.s32 1, %s2923_s29 }
  0x48   : > { %p50_p7 = scmp.ge.s32.totalorder %s48_s20, 2  ;;  %p90_p4 = scmp.ne.s32.totalorder %s2923_s29, %s2919_s28 }
  0x49   : > { %p91_p9 = scmp.eq.s32.totalorder %s2935_s12, 0  ;;  %p96_p10 = scmp.ne.s32.totalorder %s2919_s28, %s2915_s27 }
  0x4a   : > { %s3659_s20 = smov (%p50_p7, %s48_s20), 0  ;;  %p366_p13 = scmp.eq.s32.totalorder %s2331_s23, 1 }
  0x4b   : > { %3636 = sst [smem:[#allocation22_spill]] %s3659_s20  ;;  %p3118_p8 = por %p91_p9, %p90_p4 }
  0x4c   : > { %2543 = dma.hbm_to_vmem [thread:$0]  (!%p3069_p6), %s3635_s8, 16, %s428_s13, [#allocation13]  }
  0x4d   : > { %s80_s11 = ssub.s32 %s2931_s14, %s3659_s20  ;;  %p360_p6 = scmp.eq.s32.totalorder %s3055_s15, 1 }
  0x4e   : > { %p81_p11 = scmp.eq.s32.totalorder %s80_s11, 0  ;;  %p3129_p12 = por %p97_p1, %p96_p10 }
  0x4f   : > { %p3133_p5 = por %p360_p6, %p90_p4  ;;  %p3140_p0 = por %p366_p13, %p96_p10 }
  0x50   : > { %s3138_s24 = scalar_select %p81_p11, %s2923_s29, %s83_s19  }
  0x51   : > { %s3641_s18 = scalar_select %p3140_p0, 1, 0 }
  0x52   : > { %3640 = sst [smem:[#allocation23_spill]] %s3138_s24  ;;  %p2559_p2 = scmp.lt.s32.totalorder %s2935_s12, 2 }
  0x53   : > { %3642 = sst [smem:[#allocation24_spill]] %s3641_s18  ;;  %s460_s17 = sand.u32 1, %s2923_s29  }
  0x54   : > { %s2339_s25 = sshll.u32 %s2931_s14, 7  ;;  %s2338_s11 = sshll.u32 %s460_s17, 3 }
  0x55   : > { %s3643_s1 = sld [smem:[#allocation25_spill]]  ;;  %s464_s6 = scalar_lea.vmem [#allocation3], %s2338_s11 }
  0x56   : > { %s471_s8 = sshll.u32 %s464_s6, 4  ;;  %p3152_p7 = pnand %p2559_p2, %p3118_p8  ;;  %s472_s8 = int_to_ptr.vmem [resolvable:$true] %s471_s8 }
  0x57   : > { %s2340_s23 = sshll.u32 %s460_s17, 4  ;;  %s461_s19 = scalar_lea.sflag [#allocation4], %s460_s17 }
  0x58   : > { %p2785_p4 = pneg %p3152_p7  ;;  %s2796_s24 = scalar_lea.vmem %s472_s8, 128 }
  0x59   : > { %p2797_p9 = scmp.ne.s32.totalorder %s472_s8, %s2796_s24  ;;  %s2943_s3 = smov [#allocation3]  }
  0x5a   : > { %s2801_s6 = sshll.u32 %s2943_s3, 4  ;;  %s2802_s6 = int_to_ptr.vmem [resolvable:$false] %s2801_s6 }
  0x5b   : > { %s469_s4 = scalar_lea.hbm %s3643_s1, %s2339_s25  ;;  %p2799_p10 = pnand %p2797_p9, %p2785_p4 }
  0x5c   : > { %s2803_s25 = scalar_lea.vmem %s2802_s6, 256  ;;  %p2804_p8 = scmp.lt.s32.totalorder %s472_s8, %s2802_s6 }
  0x5d   : > { %p2800_p6 = pneg %p2799_p10  ;;  %p2805_p11 = scmp.lt.s32.totalorder %s2803_s25, %s2796_s24 }
  0x5f   : > { %p2806_p13 = por %p2805_p11, %p2804_p8 }
  0x61   : > { %p2807_p2 = pnand %p2806_p13, %p2800_p6 }
  0x63   : > { %2810 = shalt.err (!%p2807_p2)
}
  0x64   : > { %2547 = dma.hbm_to_vmem [thread:$0]  (!%p3152_p7), %s469_s4, 128, %s472_s8, %s461_s19  }
  0x65   : > { %s2406_s26 = sshll.u32 %s2931_s14, 8  ;;  %s482_s22 = scalar_lea.vmem [#allocation6], %s2340_s23 }
  0x66   : > { %s490_s17 = sshll.u32 %s482_s22, 4  ;;  %s478_s11 = sand.u32 1, %s2935_s12   ;;  %s491_s17 = int_to_ptr.vmem [resolvable:$true] %s490_s17 }
  0x67   : > { %s489_s29 = scalar_lea.hbm %s3604_s2, %s2406_s26  ;;  %s479_s6 = scalar_lea.sflag [#allocation7], %s478_s11 }
  0x68   : > { %s2824_s24 = scalar_lea.vmem %s491_s17, 256  ;;  %s2944_s25 = smov [#allocation6]  }
  0x69   : > { %p2825_p9 = scmp.ne.s32.totalorder %s491_s17, %s2824_s24  ;;  %s2829_s18 = sshll.u32 %s2944_s25, 4  ;;  %s2830_s18 = int_to_ptr.vmem [resolvable:$false] %s2829_s18 }
  0x6a   : > { %s2831_s4 = scalar_lea.vmem %s2830_s18, 512  ;;  %p2832_p8 = scmp.lt.s32.totalorder %s491_s17, %s2830_s18 }
  0x6b   : > { %p2827_p10 = pnand %p2825_p9, %p2785_p4  ;;  %p2833_p11 = scmp.lt.s32.totalorder %s2831_s4, %s2824_s24 }
  0x6d   : > { %p2828_p6 = pneg %p2827_p10  ;;  %p2834_p13 = por %p2833_p11, %p2832_p8 }
  0x6f   : > { %p2835_p2 = pnand %p2834_p13, %p2828_p6 }
  0x71   : > { %2838 = shalt.err (!%p2835_p2)
}
  0x72   : > { %s3645_s1 = smov 8   ;;  %s3646_s8 = smov 128  }
  0x73   : > { %2550 = dma.hbm_to_vmem [thread:$0]  (!%p3152_p7), %s489_s29, 256, %s491_s17, %s479_s6, %s3646_s8, %s3646_s8, %s3645_s1  }
  0x74   : > { %502 = sbr.rel (%p3060_p3) target bundleno = 1667 (0x683), region = 72  ;;  %s3179_s23 = sand.u32 (!%p3060_p3), 1, %s2919_s28  }
  0x75   : > { %s2344_s18 = sshll.u32 (!%p3060_p3), %s3179_s23, 3  ;;  %s505_s19 = scalar_lea.sflag (!%p3060_p3), [#allocation4], %s3179_s23 }
  0x76   : > { %s3183_s26 = scalar_lea.vmem (!%p3060_p3), [#allocation3], %s2344_s18 }
  0x79   : > { %2890 = dma.done.wait (%p3129_p12), %s505_s19, 128  }
  0x7a   : > { %2892 = vsyncadd (%p3129_p12), %s505_s19, 4294967168  ;;  %s513_s29 = sand.u32 1, %s3055_s15   ;;  %s2345_s16 = sshll.u32 %s3179_s23, 4 }
  0x7b   : > { %s514_s20 = scalar_lea.sflag [#allocation7], %s513_s29  ;;  %s3193_s22 = scalar_lea.vmem [#allocation6], %s2345_s16 }
  0x7c   : > { %2894 = dma.done.wait (%p3129_p12), %s514_s20, 256  }
  0x7d   : > { %2896 = vsyncadd (%p3129_p12), %s514_s20, 4294967040 }
  0x7e   : > { %2898 = dma.done.wait (%p97_p1), [#allocation7], 256  }
  0x7f   : > { %2900 = vsyncadd (%p97_p1), [#allocation7], 4294967040 }
  0x80   : > { %2902 = dma.done.wait (%p97_p1), [#allocation10], 32  }
  0x81   : > { %2904 = vsyncadd (%p97_p1), [#allocation10], 4294967264 }
  0x82   : > { %2906 = dma.done.wait (%p97_p1), [#allocation13], 16  }
  0x83   : > { %2908 = vsyncadd (%p97_p1), [#allocation13], 4294967280  ;;  %p588_p3 = scmp.lt.s32.totalorder %s2927_s30, 1  ;;  %v602_v1 = vlaneseq  ;;  %v2945_v2 = vmov 1966171168   ;;  %v704_v7 = vld [vmem:[#allocation8 + $0x8] sm:$0xff] }
  0x84   : > { %v600_v3 = vunpack.c.l.s4 %v2945_v2  ;;  %v703_v8 = vld [vmem:[#allocation8] sm:$0xff]  ;;  %2447 = vmatprep.subr.mxu0 %v704_v7  ;;  %v596_v16 = vld [vmem:[%s3183_s26] sm:$0xff]  ;;  %vm712_vm0 = vcmask 130048   ;;  %vm1174_vm1 = vcmask 64512   ;;  %s3647_s3 = sld [smem:[#allocation30_spill]]  ;;  %vm1673_vm3 = vcmask 1041409  }
  0x85   : > { %s589_s13 = scalar_select %p588_p3, %s2927_s30, 1  ;;  %v3214_v4 = vshrl.u32 %v602_v1, 7  ;;  %2448 = vmatpush3.msra.mxu0 %v704_v7  ;;  %v859_v49 = vld [vmem:[%s3607_s5 + $0x8] sm:$0xff]  ;;  %v858_v50 = vld [vmem:[%s3607_s5] sm:$0xff]  ;;  %vm1675_vm4 = vcmask 1042434   ;;  %vm1677_vm5 = vcmask 1043459  }
  0x86   : > { %v601_v5 = vunpack.c.0.s8 %v600_v3  ;;  %2449 = vmatprep.subr.mxu0 %v703_v8  ;;  %2463 = vmatprep.subr.mxu1 %v859_v49  ;;  %v1013_v51 = vld [vmem:[%s3609_s7 + $0x8] sm:$0xff]  ;;  %v2352_v52 = vld [vmem:[#allocation9] ss:$0 sm:$0xff]  ;;  %vm1679_vm6 = vcmask 1044484   ;;  %vm1681_vm7 = vcmask 1045509   ;;  %vm1683_vm8 = vcmask 1046534  }
  0x87   : > { %s2351_s17 = sshll.u32 %s589_s13, 3  ;;  %v3221_v12 = vsub.s32 0, %v3214_v4  ;;  %2450 = vmatpush3.msra.mxu0 %v703_v8  ;;  %2464 = vmatpush3.msra.mxu1 %v859_v49  ;;  %vm1685_vm9 = vcmask 1047559   ;;  %s3648_s25 = sld [smem:[#allocation31_spill]] }
  0x88   : > { %s594_s6 = scalar_lea.vmem %s3602_s0, %s2351_s17  ;;  %v604_v6 = vsub.s32 %v601_v5, %v3214_v4  ;;  %2465 = vmatprep.subr.mxu1 %v858_v50  ;;  %2479 = vmatprep.subr.mxu0 %v1013_v51  ;;  %s2948_s8 = smov [#allocation14]  }
  0x89   : > { %v595_v9 = vld [vmem:[%s594_s6] sm:$0xff]  ;;  %2466 = vmatpush3.msra.mxu1 %v858_v50  ;;  %s2843_s18 = sshll.u32 %s2948_s8, 4  ;;  %s2844_s18 = int_to_ptr.vmem [resolvable:$false] %s2843_s18 }
  0x8a   : > { %v598_v10 = vcombine.high %v595_v9, %v595_v9  ;;  %v605_v11 = vrot.slane %v595_v9, %v604_v6  ;;  %s2845_s19 = scalar_lea.vmem %s2844_s18, 512 }
  0x8c   : > { %v612_v13 = vrot.slane %v598_v10, %v604_v6  ;;  %v613_v14 = vcombine.high %v605_v11, %v605_v11  ;;  %v621_v15 = vrot.slane %v605_v11, %v604_v6 }
  0x8e   : > { %v643_v17 = vcombine.high %v621_v15, %v621_v15  ;;  %v650_v18 = vrot.slane %v621_v15, %v3221_v12  ;;  %v635_v19 = vrot.slane %v613_v14, %v604_v6  ;;  %v628_v20 = vrot.slane %v612_v13, %v604_v6 }
  0x8f   : > { %v614_v21 = vcombine.high %v612_v13, %v612_v13 }
  0x90   : > { %v687_v22 = vsub.f32 %v650_v18, %v596_v16  ;;  %v654_v23 = vrot.slane %v635_v19, %v3221_v12  ;;  %v658_v24 = vrot.slane %v643_v17, %v3221_v12  ;;  %v645_v25 = vcombine.high %v635_v19, %v635_v19 }
  0x91   : > { %v666_v26 = vrot.slane %v628_v20, %v3221_v12  ;;  %v642_v27 = vrot.slane %v614_v21, %v604_v6  ;;  %v644_v28 = vcombine.high %v628_v20, %v628_v20 }
  0x92   : > { %v695_v29 = vand.u32 2147483647, %v687_v22  ;;  %v688_v30 = vsub.f32 %v654_v23, %v596_v16  ;;  %v689_v31 = vsub.f32 %v658_v24, %v596_v16  ;;  %v662_v32 = vrot.slane %v645_v25, %v3221_v12  ;;  %v1012_v24 = vld [vmem:[%s3609_s7] sm:$0xff] }
  0x93   : > { %v691_v33 = vsub.f32 %v666_v26, %v596_v16  ;;  %v670_v34 = vrot.slane %v642_v27, %v3221_v12  ;;  %v674_v35 = vrot.slane %v644_v28, %v3221_v12  ;;  %v646_v36 = vcombine.high %v642_v27, %v642_v27  ;;  %v1166_v25 = vld [vmem:[%s3611_s9] sm:$0xff] }
  0x94   : > { %2451 = vmatprep.mubr.msk.f32.mxu0 %vm712_vm0, %v695_v29  ;;  %v696_v37 = vand.u32 2147483647, %v688_v30  ;;  %v697_v38 = vand.u32 2147483647, %v689_v31  ;;  %v690_v39 = vsub.f32 %v662_v32, %v596_v16  ;;  %2495 = vmatprep.subr.mxu1 %v1166_v25  ;;  %v2361_v26 = vld [vmem:[#allocation11] ss:$0 sm:$0xff] }
  0x95   : > { %v692_v41 = vsub.f32 %v670_v34, %v596_v16  ;;  %v678_v42 = vrot.slane %v646_v36, %v3221_v12  ;;  %v699_v43 = vand.u32 2147483647, %v691_v33  ;;  %v693_v44 = vsub.f32 %v674_v35, %v596_v16 }
  0x96   : > { %2452 = vmatmul.mubr.msk.f32.vlgmr.msra.gmra.mxu0 %vm712_vm0, %v696_v37  ;;  %v698_v40 = vand.u32 2147483647, %v690_v39 }
  0x97   : > { %2454 = vmatprep.mubr.msk.f32.mxu0 %vm712_vm0, %v697_v38  ;;  %v700_v45 = vand.u32 2147483647, %v692_v41  ;;  %v694_v46 = vsub.f32 %v678_v42, %v596_v16  ;;  %v701_v47 = vand.u32 2147483647, %v693_v44  ;;  %2480 = vmatpush3.msra.mxu0 %v1013_v51 }
  0x98   : > { %2481 = vmatprep.subr.mxu0 %v1012_v24 }
  0x99   : > { %v702_v48 = vand.u32 2147483647, %v694_v46  ;;  %2482 = vmatpush3.msra.mxu0 %v1012_v24 }
  0x9a   : > { %2455 = vmatmul.mubr.msk.f32.gmra.mxu0 %vm712_vm0, %v698_v40 }
  0x9b   : > { %2457 = vmatprep.mubr.msk.f32.mxu0 %vm712_vm0, %v699_v43 }
  0x9e   : > { %2458 = vmatmul.mubr.msk.f32.gmra.mxu0 %vm712_vm0, %v700_v45 }
  0x9f   : > { %2460 = vmatprep.mubr.msk.f32.mxu0 %vm712_vm0, %v701_v47 }
  0xa2   : > { %2461 = vmatmul.mubr.msk.f32.gmra.mxu0 %vm712_vm0, %v702_v48 }
 0x156   : > { %v2453_v53 = vpop.f32.mrf.mxu0 }
 0x157   : > { %v809_v54 = vadd.f32 %v2453_v53, %v2352_v52 }
 0x158   : > { %v803_v55 = vpop.f32.mrf.mxu0 }
 0x159   : > { %v804_v56 = vadd.f32 %v2352_v52, %v803_v55  ;;  %v843_v57 = vmul.f32 0.01, %v809_v54 }
 0x15a   : > { %v2456_v58 = vpop.f32.mrf.mxu0 }
 0x15b   : > { %v842_v59 = vmul.f32 0.01, %v804_v56  ;;  %v819_v60 = vadd.f32 %v2456_v58, %v2352_v52  ;;  %v851_v0 = vmax.f32 %v809_v54, %v843_v57 }
 0x15c   : > { %v813_v61 = vpop.f32.mrf.mxu0 }
 0x15d   : > { %v814_v62 = vadd.f32 %v2352_v52, %v813_v61  ;;  %v850_v63 = vmax.f32 %v804_v56, %v842_v59  ;;  %v845_v2 = vmul.f32 0.01, %v819_v60  ;;  %v2370_v59 = vld [vmem:[#allocation12] ss:$0 sm:$0xff] }
 0x15e   : > { %v2459_v3 = vpop.f32.mrf.mxu0 }
 0x15f   : > { %v844_v5 = vmul.f32 0.01, %v814_v62  ;;  %v829_v6 = vadd.f32 %v2459_v3, %v2352_v52  ;;  %2467 = vmatprep.mubr.msk.f32.mxu1 %vm712_vm0, %v850_v63  ;;  %v853_v10 = vmax.f32 %v819_v60, %v845_v2 }
 0x160   : > { %v823_v7 = vpop.f32.mrf.mxu0  ;;  %2468 = vmatmul.mubr.msk.f32.vlgmr.msra.gmra.mxu1 %vm712_vm0, %v851_v0 }
 0x161   : > { %v852_v8 = vmax.f32 %v814_v62, %v844_v5  ;;  %v824_v9 = vadd.f32 %v2352_v52, %v823_v7  ;;  %v847_v11 = vmul.f32 0.01, %v829_v6  ;;  %2496 = vmatpush3.msra.mxu1 %v1166_v25 }
 0x162   : > { %v2462_v13 = vpop.f32.mrf.mxu0 }
 0x163   : > { %v846_v14 = vmul.f32 0.01, %v824_v9  ;;  %v839_v15 = vadd.f32 %v2462_v13, %v2352_v52  ;;  %2470 = vmatprep.mubr.msk.f32.mxu1 %vm712_vm0, %v852_v8  ;;  %v855_v19 = vmax.f32 %v829_v6, %v847_v11 }
 0x164   : > { %v833_v16 = vpop.f32.mrf.mxu0  ;;  %2471 = vmatmul.mubr.msk.f32.gmra.mxu1 %vm712_vm0, %v853_v10 }
 0x165   : > { %v854_v17 = vmax.f32 %v824_v9, %v846_v14  ;;  %v834_v18 = vadd.f32 %v2352_v52, %v833_v16  ;;  %v849_v20 = vmul.f32 0.01, %v839_v15 }
 0x167   : > { %v848_v21 = vmul.f32 0.01, %v834_v18  ;;  %2473 = vmatprep.mubr.msk.f32.mxu1 %vm712_vm0, %v854_v17  ;;  %v857_v23 = vmax.f32 %v839_v15, %v849_v20 }
 0x168   : > { %2474 = vmatmul.mubr.msk.f32.gmra.mxu1 %vm712_vm0, %v855_v19 }
 0x169   : > { %v856_v22 = vmax.f32 %v834_v18, %v848_v21 }
 0x16b   : > { %2476 = vmatprep.mubr.msk.f32.mxu1 %vm712_vm0, %v856_v22 }
 0x16c   : > { %2477 = vmatmul.mubr.msk.f32.gmra.mxu1 %vm712_vm0, %v857_v23 }
 0x220   : > { %v2469_v27 = vpop.f32.mrf.mxu1 }
 0x221   : > { %v963_v28 = vadd.f32 %v2469_v27, %v2361_v26 }
 0x222   : > { %v957_v29 = vpop.f32.mrf.mxu1 }
 0x223   : > { %v958_v30 = vadd.f32 %v2361_v26, %v957_v29  ;;  %v997_v31 = vmul.f32 0.01, %v963_v28 }
 0x224   : > { %v2472_v32 = vpop.f32.mrf.mxu1 }
 0x225   : > { %v996_v33 = vmul.f32 0.01, %v958_v30  ;;  %v973_v34 = vadd.f32 %v2472_v32, %v2361_v26  ;;  %v1005_v38 = vmax.f32 %v963_v28, %v997_v31  ;;  %v2946_v31 = vmov 0   ;;  %v2379_v32 = vld [vmem:[%s3612_s10] ss:$0 sm:$0xff] }
 0x226   : > { %v967_v35 = vpop.f32.mrf.mxu1  ;;  %2624 = vset.pattern.permute.xlu0 %v2946_v31  ;;  %2625 = vset.pattern.permute.xlu1 %v2946_v31  ;;  %v3315_v31 = vsub.s32 2, %v3214_v4 }
 0x227   : > { %v1004_v36 = vmax.f32 %v958_v30, %v996_v33  ;;  %v968_v37 = vadd.f32 %v2361_v26, %v967_v35  ;;  %v999_v39 = vmul.f32 0.01, %v973_v34 }
 0x228   : > { %v2475_v40 = vpop.f32.mrf.mxu1 }
 0x229   : > { %v998_v41 = vmul.f32 0.01, %v968_v37  ;;  %v983_v42 = vadd.f32 %v2475_v40, %v2361_v26  ;;  %2483 = vmatprep.mubr.msk.f32.mxu0 %vm712_vm0, %v1004_v36  ;;  %v1007_v46 = vmax.f32 %v973_v34, %v999_v39  ;;  %v2388_v39 = vld [vmem:[%s3647_s3] ss:$0 sm:$0xff] }
 0x22a   : > { %v977_v43 = vpop.f32.mrf.mxu1  ;;  %2484 = vmatmul.mubr.msk.f32.vlgmr.msra.gmra.mxu0 %vm712_vm0, %v1005_v38 }
 0x22b   : > { %v1006_v44 = vmax.f32 %v968_v37, %v998_v41  ;;  %v978_v45 = vadd.f32 %v2361_v26, %v977_v43  ;;  %v1001_v47 = vmul.f32 0.01, %v983_v42 }
 0x22c   : > { %v2478_v48 = vpop.f32.mrf.mxu1 }
 0x22d   : > { %v1000_v49 = vmul.f32 0.01, %v978_v45  ;;  %v993_v50 = vadd.f32 %v2478_v48, %v2361_v26  ;;  %2486 = vmatprep.mubr.msk.f32.mxu0 %vm712_vm0, %v1006_v44  ;;  %v1009_v54 = vmax.f32 %v983_v42, %v1001_v47 }
 0x22e   : > { %v987_v51 = vpop.f32.mrf.mxu1  ;;  %2487 = vmatmul.mubr.msk.f32.gmra.mxu0 %vm712_vm0, %v1007_v46 }
 0x22f   : > { %v1008_v52 = vmax.f32 %v978_v45, %v1000_v49  ;;  %v988_v53 = vadd.f32 %v2361_v26, %v987_v51  ;;  %v1003_v55 = vmul.f32 0.01, %v993_v50 }
 0x231   : > { %v1002_v56 = vmul.f32 0.01, %v988_v53  ;;  %2489 = vmatprep.mubr.msk.f32.mxu0 %vm712_vm0, %v1008_v52  ;;  %v1011_v58 = vmax.f32 %v993_v50, %v1003_v55 }
 0x232   : > { %2490 = vmatmul.mubr.msk.f32.gmra.mxu0 %vm712_vm0, %v1009_v54 }
 0x233   : > { %v1010_v57 = vmax.f32 %v988_v53, %v1002_v56 }
 0x235   : > { %2492 = vmatprep.mubr.msk.f32.mxu0 %vm712_vm0, %v1010_v57 }
 0x236   : > { %2493 = vmatmul.mubr.msk.f32.gmra.mxu0 %vm712_vm0, %v1011_v58 }
 0x2ea   : > { %v2485_v60 = vpop.f32.mrf.mxu0 }
 0x2eb   : > { %v1117_v61 = vadd.f32 %v2485_v60, %v2370_v59 }
 0x2ec   : > { %v1111_v62 = vpop.f32.mrf.mxu0 }
 0x2ed   : > { %v1112_v63 = vadd.f32 %v2370_v59, %v1111_v62  ;;  %v1151_v0 = vmul.f32 0.01, %v1117_v61 }
 0x2ee   : > { %v2488_v2 = vpop.f32.mrf.mxu0 }
 0x2ef   : > { %v1150_v3 = vmul.f32 0.01, %v1112_v63  ;;  %v1127_v5 = vadd.f32 %v2488_v2, %v2370_v59  ;;  %v1159_v9 = vmax.f32 %v1117_v61, %v1151_v0 }
 0x2f0   : > { %v1121_v6 = vpop.f32.mrf.mxu0 }
 0x2f1   : > { %v1158_v7 = vmax.f32 %v1112_v63, %v1150_v3  ;;  %v1122_v8 = vadd.f32 %v2370_v59, %v1121_v6  ;;  %v1153_v10 = vmul.f32 0.01, %v1127_v5 }
 0x2f2   : > { %v2491_v11 = vpop.f32.mrf.mxu0 }
 0x2f3   : > { %v1152_v13 = vmul.f32 0.01, %v1122_v8  ;;  %v1137_v14 = vadd.f32 %v2491_v11, %v2370_v59  ;;  %2497 = vmatprep.mubr.msk.f32.mxu1 %vm1174_vm1, %v1158_v7  ;;  %v1161_v18 = vmax.f32 %v1127_v5, %v1153_v10 }
 0x2f4   : > { %v1131_v15 = vpop.f32.mrf.mxu0  ;;  %2498 = vmatmul.mubr.msk.f32.vlgmr.msra.gmra.mxu1 %vm1174_vm1, %v1159_v9 }
 0x2f5   : > { %v1160_v16 = vmax.f32 %v1122_v8, %v1152_v13  ;;  %v1132_v17 = vadd.f32 %v2370_v59, %v1131_v15  ;;  %v1155_v19 = vmul.f32 0.01, %v1137_v14 }
 0x2f6   : > { %v2494_v20 = vpop.f32.mrf.mxu0 }
 0x2f7   : > { %v1154_v21 = vmul.f32 0.01, %v1132_v17  ;;  %v1147_v22 = vadd.f32 %v2494_v20, %v2370_v59  ;;  %2500 = vmatprep.mubr.msk.f32.mxu1 %vm1174_vm1, %v1160_v16  ;;  %v1163_v26 = vmax.f32 %v1137_v14, %v1155_v19  ;;  %v3292_v19 = vand.u32 127, %v602_v1 }
 0x2f8   : > { %v1141_v23 = vpop.f32.mrf.mxu0  ;;  %2501 = vmatmul.mubr.msk.f32.gmra.mxu1 %vm1174_vm1, %v1161_v18 }
 0x2f9   : > { %v1162_v24 = vmax.f32 %v1132_v17, %v1154_v21  ;;  %v1142_v25 = vadd.f32 %v2370_v59, %v1141_v23  ;;  %v1157_v27 = vmul.f32 0.01, %v1147_v22  ;;  %vm1440_vm2 = vcmp.eq.s32.totalorder %v3214_v4, %v3292_v19 }
 0x2fb   : > { %v1156_v28 = vmul.f32 0.01, %v1142_v25  ;;  %2503 = vmatprep.mubr.msk.f32.mxu1 %vm1174_vm1, %v1162_v24  ;;  %v1165_v30 = vmax.f32 %v1147_v22, %v1157_v27  ;;  %v2947_v22 = vmov 0.0   ;;  %v3307_v27 = vsub.s32 1, %v3214_v4 }
 0x2fc   : > { %2504 = vmatmul.mubr.msk.f32.gmra.mxu1 %vm1174_vm1, %v1163_v26  ;;  %v3298_v23 = vsel %vm1440_vm2, 1.0, %v2947_v22 }
 0x2fd   : > { %v1164_v29 = vmax.f32 %v1142_v25, %v1156_v28  ;;  %v1443_v24 = vsub.f32 1.0, %v3298_v23  ;;  %v1444_v25 = vld [vmem:[%s3193_s22] sm:$0xff]  ;;  %v3310_v28 = vsub.s32 5, %v3214_v4 }
 0x2ff   : > { %2506 = vmatprep.mubr.msk.f32.mxu1 %vm1174_vm1, %v1164_v29  ;;  %v3302_v26 = vmul.f32 %v1444_v25, %v1443_v24  ;;  %v2389_v29 = vld [vmem:[#allocation2] ss:$0 sm:$0xff] }
 0x300   : > { %2507 = vmatmul.mubr.msk.f32.gmra.mxu1 %vm1174_vm1, %v1165_v30 }
 0x301   : > { %v1459_v1 = vrot.slane %v3302_v26, %v3221_v12  ;;  %v1466_v30 = vrot.slane %v3302_v26, %v3307_v27 }
 0x3b4   : > { %v2499_v33 = vpop.f32.mrf.mxu1 }
 0x3b5   : > { %v1271_v34 = vadd.f32 %v2499_v33, %v2379_v32  ;;  %v3320_v33 = vsub.s32 6, %v3214_v4 }
 0x3b6   : > { %v1265_v35 = vpop.f32.mrf.mxu1 }
 0x3b7   : > { %v1305_v36 = vmul.f32 0.01, %v1271_v34  ;;  %v1266_v37 = vadd.f32 %v2379_v32, %v1265_v35  ;;  %v3325_v35 = vsub.s32 3, %v3214_v4 }
 0x3b8   : > { %v2502_v38 = vpop.f32.mrf.mxu1 }
 0x3b9   : > { %v1313_v40 = vmax.f32 %v1271_v34, %v1305_v36  ;;  %v1304_v41 = vmul.f32 0.01, %v1266_v37  ;;  %v1281_v42 = vadd.f32 %v2502_v38, %v2379_v32  ;;  %v1473_v34 = vrot.slane %v3302_v26, %v3315_v31  ;;  %v2399_v36 = vld [vmem:[%s3193_s22 + $0x8] sm:$0xff]  ;;  %s587_s22 = scalar_lea.vmem [#allocation14], %s2345_s16  ;;  %s2407_s16 = sshll.u32 %s2927_s30, 8 }
 0x3ba   : > { %v1275_v43 = vpop.f32.mrf.mxu1  ;;  %v3331_v38 = vsub.s32 7, %v3214_v4  ;;  %s2169_s6 = sshll.u32 %s587_s22, 4  ;;  %s3549_s4 = scalar_lea.hbm %s3648_s25, %s2407_s16  ;;  %s3551_s6 = int_to_ptr.vmem [resolvable:$true] %s2169_s6 }
 0x3bb   : > { %v1312_v44 = vmax.f32 %v1266_v37, %v1304_v41  ;;  %v1307_v45 = vmul.f32 0.01, %v1281_v42  ;;  %v1276_v46 = vadd.f32 %v2379_v32, %v1275_v43  ;;  %v1328_v47 = vmul.f32 %v2388_v39, %v1313_v40  ;;  %s2155_s30 = scalar_lea.sflag [#allocation5], %s3179_s23  ;;  %s2839_s1 = scalar_lea.vmem %s3551_s6, 256 }
 0x3bc   : > { %v2505_v48 = vpop.f32.mrf.mxu1  ;;  %v1501_v37 = vrot.slane %v3302_v26, %v3320_v33  ;;  %v3335_v40 = vmul.f32 %v2399_v36, %v1443_v24  ;;  %v1508_v41 = vrot.slane %v3302_v26, %v3331_v38  ;;  %p2840_p1 = scmp.ne.s32.totalorder %s3551_s6, %s2839_s1  ;;  %p2846_p4 = scmp.lt.s32.totalorder %s3551_s6, %s2844_s18 }
 0x3bd   : > { %v1315_v49 = vmax.f32 %v1281_v42, %v1307_v45  ;;  %v1306_v50 = vmul.f32 0.01, %v1276_v46  ;;  %v1291_v51 = vadd.f32 %v2505_v48, %v2379_v32  ;;  %v1338_v52 = vsel %vm1174_vm1, %v1328_v47, 0.0  ;;  %p2847_p9 = scmp.lt.s32.totalorder %s2845_s19, %s2839_s1 }
 0x3be   : > { %1339 = vadd.xlane.f32.xlu0 %v1338_v52  ;;  %v1285_v53 = vpop.f32.mrf.mxu1  ;;  %v1327_v54 = vmul.f32 %v2388_v39, %v1312_v44  ;;  %v1532_v42 = vrot.slane %v3335_v40, %v3221_v12  ;;  %v1574_v43 = vrot.slane %v3335_v40, %v3320_v33  ;;  %v1539_v44 = vrot.slane %v3335_v40, %v3307_v27  ;;  %p2841_p12 = pnand %p2840_p1, %p3133_p5 }
 0x3bf   : > { %v1314_v55 = vmax.f32 %v1276_v46, %v1306_v50  ;;  %v1309_v56 = vmul.f32 0.01, %v1291_v51  ;;  %v1286_v57 = vadd.f32 %v2379_v32, %v1285_v53  ;;  %v1330_v58 = vmul.f32 %v2388_v39, %v1315_v49  ;;  %p2848_p10 = por %p2847_p9, %p2846_p4 }
 0x3c0   : > { %v2508_v59 = vpop.f32.mrf.mxu1  ;;  %v1335_v60 = vsel %vm1174_vm1, %v1327_v54, 0.0  ;;  %v3346_v45 = vsub.s32 4, %v3214_v4  ;;  %v1546_v47 = vrot.slane %v3335_v40, %v3315_v31  ;;  %v1553_v48 = vrot.slane %v3335_v40, %v3325_v35  ;;  %p2842_p7 = pneg %p2841_p12 }
 0x3c1   : > { %v1317_v61 = vmax.f32 %v1291_v51, %v1309_v56  ;;  %v1308_v62 = vmul.f32 0.01, %v1286_v57  ;;  %v1301_v63 = vadd.f32 %v2508_v59, %v2379_v32  ;;  %v1344_v0 = vsel %vm1174_vm1, %v1330_v58, 0.0 }
 0x3c2   : > { %1345 = vadd.xlane.f32.xlu1 %v1344_v0  ;;  %1336 = vadd.xlane.f32.xlu0 %v1335_v60  ;;  %v1295_v2 = vpop.f32.mrf.mxu1  ;;  %v1329_v3 = vmul.f32 %v2388_v39, %v1314_v55  ;;  %v1487_v46 = vrot.slane %v3302_v26, %v3346_v45  ;;  %v1560_v49 = vrot.slane %v3335_v40, %v3346_v45  ;;  %p2849_p6 = pnand %p2848_p10, %p2842_p7 }
 0x3c3   : > { %v1316_v5 = vmax.f32 %v1286_v57, %v1308_v62  ;;  %v1311_v6 = vmul.f32 0.01, %v1301_v63  ;;  %v1296_v7 = vadd.f32 %v2379_v32, %v1295_v2  ;;  %v1332_v8 = vmul.f32 %v2388_v39, %v1317_v61 }
 0x3c4   : > { %v1341_v11 = vsel %vm1174_vm1, %v1329_v3, 0.0  ;;  %v1494_v32 = vrot.slane %v3302_v26, %v3310_v28  ;;  %v1567_v50 = vrot.slane %v3335_v40, %v3310_v28  ;;  %v1581_v51 = vrot.slane %v3335_v40, %v3331_v38 }
 0x3c5   : > { %v1319_v9 = vmax.f32 %v1301_v63, %v1311_v6  ;;  %v1310_v10 = vmul.f32 0.01, %v1296_v7  ;;  %v1331_v13 = vmul.f32 %v2388_v39, %v1316_v5  ;;  %v1350_v16 = vsel %vm1174_vm1, %v1332_v8, 0.0 }
 0x3c6   : > { %1342 = vadd.xlane.f32.xlu1 %v1341_v11 }
 0x3c7   : > { %v1318_v14 = vmax.f32 %v1296_v7, %v1310_v10  ;;  %v1347_v15 = vsel %vm1174_vm1, %v1331_v13, 0.0  ;;  %v1334_v18 = vmul.f32 %v2388_v39, %v1319_v9 }
 0x3c8   : > { %1348 = vadd.xlane.f32.xlu0 %v1347_v15 }
 0x3c9   : > { %v1333_v17 = vmul.f32 %v2388_v39, %v1318_v14  ;;  %v1356_v21 = vsel %vm1174_vm1, %v1334_v18, 0.0  ;;  %v1480_v39 = vrot.slane %v3302_v26, %v3325_v35 }
 0x3ca   : > { %1351 = vadd.xlane.f32.xlu1 %v1350_v16 }
 0x3cb   : > { %v1353_v20 = vsel %vm1174_vm1, %v1333_v17, 0.0 }
 0x3cc   : > { %1354 = vadd.xlane.f32.xlu0 %v1353_v20 }
 0x3ce   : > { %1357 = vadd.xlane.f32.xlu1 %v1356_v21 }
 0x3df   : > { %1461 = vbcast.lane.b32.xlu1 %v1459_v1, 256 }
 0x3e2   : > { %1366 = vperm.xlu0 %2624, %v2389_v29  }
 0x3e3   : > { %1468 = vbcast.lane.b32.xlu1 %v1466_v30, 256 }
 0x3e6   : > { %1496 = vbcast.lane.b32.xlu0 %v1494_v32, 256 }
 0x3e7   : > { %1475 = vbcast.lane.b32.xlu1 %v1473_v34, 256 }
 0x3ea   : > { %1503 = vbcast.lane.b32.xlu0 %v1501_v37, 256 }
 0x3eb   : > { %1482 = vbcast.lane.b32.xlu1 %v1480_v39, 256 }
 0x3ee   : > { %1510 = vbcast.lane.b32.xlu0 %v1508_v41, 256 }
 0x3ef   : > { %1534 = vbcast.lane.b32.xlu1 %v1532_v42, 256 }
 0x3f2   : > { %1576 = vbcast.lane.b32.xlu0 %v1574_v43, 256 }
 0x3f3   : > { %1541 = vbcast.lane.b32.xlu1 %v1539_v44, 256 }
 0x3f7   : > { %1489 = vbcast.lane.b32.xlu1 %v1487_v46, 256 }
 0x3fb   : > { %1548 = vbcast.lane.b32.xlu1 %v1546_v47, 256 }
 0x3ff   : > { %1555 = vbcast.lane.b32.xlu1 %v1553_v48, 256 }
 0x403   : > { %1562 = vbcast.lane.b32.xlu1 %v1560_v49, 256 }
 0x407   : > { %1569 = vbcast.lane.b32.xlu1 %v1567_v50, 256 }
 0x40b   : > { %1583 = vbcast.lane.b32.xlu1 %v1581_v51, 256 }
 0x447   : > { %v1340_v52 = vpop.xlane.xlu0 %1339 }
 0x44b   : > { %v1346_v53 = vpop.xlane.xlu1 %1345  ;;  %v1337_v54 = vpop.xlane.xlu0 %1336 }
 0x44f   : > { %v1343_v55 = vpop.xlane.xlu1 %1342 }
 0x451   : > { %v1349_v56 = vpop.xlane.xlu0 %1348 }
 0x453   : > { %v1352_v57 = vpop.xlane.xlu1 %1351 }
 0x455   : > { %v1355_v59 = vpop.xlane.xlu0 %1354 }
 0x457   : > { %v1358_v58 = vpop.xlane.xlu1 %1357 }
 0x45b   : > { %v3360_v60 = vpop.permute.xlu1 %1461 }
 0x45d   : > { %v1367_v61 = vpop.permute.xlu0 %1366 }
 0x45e   : > { %v1369_v62 = vadd.f32 %v1367_v61, %v1337_v54  ;;  %v1370_v63 = vadd.f32 %v1367_v61, %v1340_v52  ;;  %v1371_v0 = vadd.f32 %v1367_v61, %v1343_v55  ;;  %v1372_v2 = vadd.f32 %v1367_v61, %v1346_v53 }
 0x45f   : > { %v1469_v3 = vpop.permute.xlu1 %1468  ;;  %v1374_v10 = vadd.f32 %v1367_v61, %v1352_v57  ;;  %v1373_v11 = vadd.f32 %v1367_v61, %v1349_v56  ;;  %v1376_v17 = vadd.f32 %v1367_v61, %v1358_v58  ;;  %v1375_v21 = vadd.f32 %v1367_v61, %v1355_v59 }
 0x460   : > { %v2391_v5 = vmul.f32 -1.442695, %v1370_v63  ;;  %v2390_v6 = vmul.f32 -1.442695, %v1369_v62  ;;  %v2393_v7 = vmul.f32 -1.442695, %v1372_v2 }
 0x461   : > { %v2392_v8 = vmul.f32 -1.442695, %v1371_v0  ;;  %v2395_v14 = vmul.f32 -1.442695, %v1374_v10  ;;  %v2394_v15 = vmul.f32 -1.442695, %v1373_v11 }
 0x462   : > { %2627 = vpow2.f32 %v2391_v5  ;;  %v2397_v22 = vmul.f32 -1.442695, %v1376_v17  ;;  %v2396_v34 = vmul.f32 -1.442695, %v1375_v21 }
 0x463   : > { %v3362_v9 = vpop.permute.xlu1 %1475  ;;  %2629 = vpow2.f32 %v2393_v7 }
 0x464   : > { %2631 = vpow2.f32 %v2390_v6 }
 0x465   : > { %2633 = vpow2.f32 %v2392_v8  ;;  %v1497_v8 = vpop.permute.xlu0 %1496 }
 0x466   : > { %2635 = vpow2.f32 %v2395_v14 }
 0x467   : > { %v1483_v13 = vpop.permute.xlu1 %1482  ;;  %2637 = vpow2.f32 %v2394_v15 }
 0x46b   : > { %v1535_v16 = vpop.permute.xlu1 %1534 }
 0x46f   : > { %v2628_v18 = vpop.eup %2627  ;;  %v1542_v25 = vpop.permute.xlu1 %1541 }
 0x470   : > { %v1402_v20 = vadd.f32 1.0, %v2628_v18  ;;  %v2630_v24 = vpop.eup %2629 }
 0x471   : > { %v2632_v1 = vpop.eup %2631  ;;  %v1404_v29 = vadd.f32 1.0, %v2630_v24 }
 0x472   : > { %2639 = vrcp.f32 %v1402_v20  ;;  %v2634_v30 = vpop.eup %2633  ;;  %v1401_v32 = vadd.f32 1.0, %v2632_v1 }
 0x473   : > { %2641 = vpow2.f32 %v2397_v22  ;;  %v1403_v36 = vadd.f32 1.0, %v2634_v30  ;;  %v1490_v37 = vpop.permute.xlu1 %1489  ;;  %v2636_v39 = vpop.eup %2635 }
 0x474   : > { %2643 = vrcp.f32 %v1401_v32  ;;  %v2638_v41 = vpop.eup %2637  ;;  %v1406_v42 = vadd.f32 1.0, %v2636_v39 }
 0x475   : > { %2645 = vrcp.f32 %v1404_v29  ;;  %v1405_v44 = vadd.f32 1.0, %v2638_v41 }
 0x476   : > { %2647 = vpow2.f32 %v2396_v34 }
 0x477   : > { %2649 = vrcp.f32 %v1403_v36  ;;  %v1549_v43 = vpop.permute.xlu1 %1548 }
 0x478   : > { %2651 = vrcp.f32 %v1406_v42 }
 0x479   : > { %2653 = vrcp.f32 %v1405_v44 }
 0x47b   : > { %v1556_v54 = vpop.permute.xlu1 %1555 }
 0x47f   : > { %v2640_v46 = vpop.eup %2639  ;;  %v1563_v5 = vpop.permute.xlu1 %1562 }
 0x480   : > { %v3364_v47 = vmul.f32 %v2640_v46, %v1469_v3  ;;  %v1426_v48 = vsub.f32 1.0, %v2640_v46  ;;  %v2642_v49 = vpop.eup %2641 }
 0x481   : > { %v2644_v50 = vpop.eup %2643  ;;  %v1408_v56 = vadd.f32 1.0, %v2642_v49 }
 0x482   : > { %v1602_v51 = vand.u32 2147483647, %v3364_v47  ;;  %v3367_v52 = vmul.f32 %v1542_v25, %v1426_v48  ;;  %v2646_v53 = vpop.eup %2645  ;;  %v1425_v55 = vsub.f32 1.0, %v2644_v50  ;;  %v3370_v57 = vmul.f32 %v2644_v50, %v3360_v60 }
 0x483   : > { %v2648_v58 = vpop.eup %2647  ;;  %v3372_v59 = vmul.f32 %v2646_v53, %v1483_v13  ;;  %v1428_v62 = vsub.f32 1.0, %v2646_v53  ;;  %2655 = vrcp.f32 %v1408_v56  ;;  %v1570_v17 = vpop.permute.xlu1 %1569  ;;  %v1833_v56 = vrot.slane %v3298_v23, %v3221_v12 }
 0x484   : > { %1621 = vperm.xlu1 %2625, %v1602_v51   ;;  %v1695_v61 = vand.u32 2147483647, %v3367_v52  ;;  %v2650_v63 = vpop.eup %2649  ;;  %v3375_v0 = vmul.f32 %v1535_v16, %v1425_v55  ;;  %v1407_v2 = vadd.f32 1.0, %v2648_v58  ;;  %v1601_v3 = vand.u32 2147483647, %v3370_v57 }
 0x485   : > { %v1604_v6 = vand.u32 2147483647, %v3372_v59  ;;  %v1427_v7 = vsub.f32 1.0, %v2650_v63  ;;  %v3379_v60 = vmul.f32 %v1556_v54, %v1428_v62  ;;  %v3382_v10 = vmul.f32 %v2650_v63, %v3362_v9  ;;  %v2652_v13 = vpop.eup %2651  ;;  %v1504_v9 = vpop.permute.xlu0 %1503 }
 0x486   : > { %1618 = vperm.xlu0 %2624, %v1601_v3   ;;  %v1694_v11 = vand.u32 2147483647, %v3375_v0  ;;  %2657 = vrcp.f32 %v1407_v2  ;;  %v2654_v16 = vpop.eup %2653  ;;  %v3389_v20 = vmul.f32 %v2652_v13, %v1497_v8  ;;  %v1430_v21 = vsub.f32 1.0, %v2652_v13 }
 0x487   : > { %v3385_v14 = vmul.f32 %v1549_v43, %v1427_v7  ;;  %v1697_v15 = vand.u32 2147483647, %v3379_v60  ;;  %v1603_v18 = vand.u32 2147483647, %v3382_v10  ;;  %v1429_v24 = vsub.f32 1.0, %v2654_v16  ;;  %v1584_v39 = vpop.permute.xlu1 %1583 }
 0x488   : > { %1714 = vperm.xlu1 %2625, %v1695_v61   ;;  %v3392_v25 = vmul.f32 %v1570_v17, %v1430_v21  ;;  %v3394_v1 = vmul.f32 %v2654_v16, %v1490_v37  ;;  %v1606_v29 = vand.u32 2147483647, %v3389_v20  ;;  %v1847_v61 = vrot.slane %v3298_v23, %v3315_v31 }
 0x489   : > { %v1696_v22 = vand.u32 2147483647, %v3385_v14  ;;  %v3397_v32 = vmul.f32 %v1563_v5, %v1429_v24  ;;  %v1511_v36 = vpop.permute.xlu0 %1510  ;;  %v1854_v62 = vrot.slane %v3298_v23, %v3325_v35  ;;  %v1449_v63 = vsel %vm1174_vm1, %v3302_v26, 0.0 }
 0x48a   : > { %1711 = vperm.xlu0 %2624, %v1694_v11   ;;  %v1699_v34 = vand.u32 2147483647, %v3392_v25  ;;  %v1605_v41 = vand.u32 2147483647, %v3394_v1  ;;  %v1452_v2 = vsel %vm1174_vm1, %v3335_v40, 0.0 }
 0x48b   : > { %v1698_v37 = vand.u32 2147483647, %v3397_v32 }
 0x48c   : > { %1627 = vperm.xlu1 %2625, %v1604_v6  }
 0x48d   : > { %v1577_v51 = vpop.permute.xlu0 %1576 }
 0x48e   : > { %1624 = vperm.xlu0 %2624, %v1603_v18  }
 0x490   : > { %1720 = vperm.xlu1 %2625, %v1697_v15   ;;  %v2656_v30 = vpop.eup %2655  ;;  %v3426_v15 = vsub.s32 %v3292_v19, %v3214_v4 }
 0x491   : > { %v3401_v42 = vmul.f32 %v2656_v30, %v1511_v36  ;;  %v1432_v43 = vsub.f32 1.0, %v2656_v30 }
 0x492   : > { %1633 = vperm.xlu0 %2624, %v1606_v29  }
 0x493   : > { %v2658_v44 = vpop.eup %2657  ;;  %v3404_v46 = vmul.f32 %v1584_v39, %v1432_v43  ;;  %v1608_v49 = vand.u32 2147483647, %v3401_v42 }
 0x494   : > { %1717 = vperm.xlu1 %2625, %v1696_v22   ;;  %v3406_v48 = vmul.f32 %v2658_v44, %v1504_v9  ;;  %v1431_v50 = vsub.f32 1.0, %v2658_v44 }
 0x495   : > { %v1701_v53 = vand.u32 2147483647, %v3404_v46 }
 0x496   : > { %1630 = vperm.xlu0 %2624, %v1605_v41   ;;  %v1607_v54 = vand.u32 2147483647, %v3406_v48  ;;  %v3411_v55 = vmul.f32 %v1577_v51, %v1431_v50 }
 0x498   : > { %1726 = vperm.xlu1 %2625, %v1699_v34   ;;  %v1700_v58 = vand.u32 2147483647, %v3411_v55 }
 0x49a   : > { %1639 = vperm.xlu0 %2624, %v1608_v49  }
 0x49c   : > { %1723 = vperm.xlu1 %2625, %v1698_v37  }
 0x49e   : > { %1636 = vperm.xlu0 %2624, %v1607_v54  }
 0x4a0   : > { %1732 = vperm.xlu1 %2625, %v1701_v53  }
 0x4a2   : > { %1729 = vperm.xlu0 %2624, %v1700_v58  }
 0x4a4   : > { %1835 = vbcast.lane.b32.xlu1 %v1833_v56, 256 }
 0x4a8   : > { %1849 = vbcast.lane.b32.xlu1 %v1847_v61, 256 }
 0x4ac   : > { %1856 = vbcast.lane.b32.xlu1 %v1854_v62, 256 }
 0x4c1   : > { %1450 = vadd.xlane.f32.xlu0 %v1449_v63 }
 0x4c5   : > { %1453 = vadd.xlane.f32.xlu0 %v1452_v2 }
 0x4ff   : > { %v1622_v3 = vpop.permute.xlu1 %1621 }
 0x500   : > { %v1648_v26 = vrot.slane %v1622_v3, %v3426_v15 }
 0x501   : > { %v1619_v6 = vpop.permute.xlu0 %1618 }
 0x502   : > { %v1644_v18 = vrot.slane %v1619_v6, %v3426_v15 }
 0x503   : > { %v1715_v5 = vpop.permute.xlu1 %1714 }
 0x504   : > { %v1674_v22 = vsel %vm1673_vm3, %v1648_v26, %v1644_v18  ;;  %v1741_v24 = vrot.slane %v1715_v5, %v3426_v15  ;;  %v1868_v18 = vrot.slane %v3298_v23, %v3310_v28 }
 0x505   : > { %v1712_v8 = vpop.permute.xlu0 %1711 }
 0x506   : > { %v1737_v29 = vrot.slane %v1712_v8, %v3426_v15 }
 0x507   : > { %v1628_v7 = vpop.permute.xlu1 %1627 }
 0x508   : > { %v1656_v4 = vrot.slane %v1628_v7, %v3426_v15  ;;  %v1766_v41 = vsel %vm1673_vm3, %v1741_v24, %v1737_v29 }
 0x509   : > { %v1625_v13 = vpop.permute.xlu0 %1624 }
 0x50a   : > { %v1652_v40 = vrot.slane %v1625_v13, %v3426_v15 }
 0x50b   : > { %v1721_v11 = vpop.permute.xlu1 %1720 }
 0x50c   : > { %v1676_v19 = vsel %vm1675_vm4, %v1652_v40, %v1674_v22  ;;  %v1749_v50 = vrot.slane %v1721_v11, %v3426_v15  ;;  %v1882_v40 = vrot.slane %v3298_v23, %v3331_v38  ;;  %v1875_v22 = vrot.slane %v3298_v23, %v3320_v33 }
 0x50d   : > { %v1634_v17 = vpop.permute.xlu0 %1633  ;;  %v1678_v43 = vsel %vm1677_vm5, %v1656_v4, %v1676_v19 }
 0x50e   : > { %v1664_v51 = vrot.slane %v1634_v17, %v3426_v15 }
 0x50f   : > { %v1718_v16 = vpop.permute.xlu1 %1717 }
 0x510   : > { %v1745_v30 = vrot.slane %v1718_v16, %v3426_v15 }
 0x511   : > { %v1631_v9 = vpop.permute.xlu0 %1630 }
 0x512   : > { %v1660_v34 = vrot.slane %v1631_v9, %v3426_v15  ;;  %v1767_v44 = vsel %vm1675_vm4, %v1745_v30, %v1766_v41  ;;  %v1861_v9 = vrot.slane %v3298_v23, %v3346_v45 }
 0x513   : > { %v1727_v21 = vpop.permute.xlu1 %1726  ;;  %v1768_v61 = vsel %vm1677_vm5, %v1749_v50, %v1767_v44 }
 0x514   : > { %v1680_v37 = vsel %vm1679_vm6, %v1660_v34, %v1678_v43  ;;  %v1757_v3 = vrot.slane %v1727_v21, %v3426_v15  ;;  %v1840_v21 = vrot.slane %v3298_v23, %v3307_v27 }
 0x515   : > { %v1640_v39 = vpop.permute.xlu0 %1639  ;;  %v1682_v62 = vsel %vm1681_vm7, %v1664_v51, %v1680_v37 }
 0x516   : > { %v1672_v58 = vrot.slane %v1640_v39, %v3426_v15 }
 0x517   : > { %v1724_v36 = vpop.permute.xlu1 %1723 }
 0x518   : > { %v1753_v49 = vrot.slane %v1724_v36, %v3426_v15 }
 0x519   : > { %v1637_v53 = vpop.permute.xlu0 %1636 }
 0x51a   : > { %v1668_v54 = vrot.slane %v1637_v53, %v3426_v15  ;;  %v1769_v63 = vsel %vm1679_vm6, %v1753_v49, %v1768_v61 }
 0x51b   : > { %v1733_v56 = vpop.permute.xlu1 %1732  ;;  %v1770_v13 = vsel %vm1681_vm7, %v1757_v3, %v1769_v63 }
 0x51c   : > { %v1684_v2 = vsel %vm1683_vm8, %v1668_v54, %v1682_v62  ;;  %v1765_v5 = vrot.slane %v1733_v56, %v3426_v15 }
 0x51d   : > { %v1730_v6 = vpop.permute.xlu0 %1729  ;;  %v1686_v7 = vsel %vm1685_vm9, %v1672_v58, %v1684_v2 }
 0x51e   : > { %v1761_v8 = vrot.slane %v1730_v6, %v3426_v15  ;;  %v1688_v11 = vsel %vm1174_vm1, %v1686_v7, 0.0 }
 0x51f   : > { %1689 = vadd.xlane.f32.xlu0 %v1688_v11  ;;  %v1836_v24 = vpop.permute.xlu1 %1835 }
 0x520   : > { %v1771_v16 = vsel %vm1683_vm8, %v1761_v8, %v1770_v13 }
 0x521   : > { %v1772_v17 = vsel %vm1685_vm9, %v1765_v5, %v1771_v16 }
 0x522   : > { %v1774_v26 = vsel %vm1174_vm1, %v1772_v17, 0.0 }
 0x523   : > { %1775 = vadd.xlane.f32.xlu1 %v1774_v26  ;;  %v1850_v4 = vpop.permute.xlu1 %1849 }
 0x527   : > { %v1857_v30 = vpop.permute.xlu1 %1856 }
 0x534   : > { %1870 = vbcast.lane.b32.xlu1 %v1868_v18, 256 }
 0x535   : > { %1842 = vbcast.lane.b32.xlu0 %v1840_v21, 256 }
 0x538   : > { %1884 = vbcast.lane.b32.xlu1 %v1882_v40, 256 }
 0x539   : > { %1863 = vbcast.lane.b32.xlu0 %v1861_v9, 256 }
 0x53d   : > { %1877 = vbcast.lane.b32.xlu0 %v1875_v22, 256 }
 0x54a   : > { %v1451_v29 = vpop.xlane.xlu0 %1450 }
 0x54e   : > { %v1454_v19 = vpop.xlane.xlu0 %1453 }
 0x5a8   : > { %v1690_v34 = vpop.xlane.xlu0 %1689 }
 0x5a9   : > { %v1691_v36 = vmax.f32 %v1690_v34, 1e-12 }
 0x5ab   : > { %2659 = vrcp.f32 %v1691_v36 }
 0x5ac   : > { %v1776_v39 = vpop.xlane.xlu1 %1775  ;;  %v1843_v54 = vpop.permute.xlu0 %1842 }
 0x5ad   : > { %v1777_v41 = vmax.f32 %v1776_v39, 1e-12 }
 0x5af   : > { %2661 = vrcp.f32 %v1777_v41 }
 0x5b0   : > { %v1871_v7 = vpop.permute.xlu1 %1870  ;;  %v1864_v16 = vpop.permute.xlu0 %1863 }
 0x5b8   : > { %v2660_v43 = vpop.eup %2659 }
 0x5b9   : > { %v1693_v44 = vmul.f32 %v2660_v43, %v1451_v29  ;;  %v1885_v29 = vpop.permute.xlu1 %1884 }
 0x5bb   : > { %v1788_v37 = vrot.slane %v1693_v44, %v3307_v27  ;;  %v1804_v49 = vrot.slane %v1693_v44, %v3310_v28  ;;  %v1784_v23 = vrot.slane %v1693_v44, %v3221_v12  ;;  %v1800_v56 = vrot.slane %v1693_v44, %v3346_v45 }
 0x5bc   : > { %v2662_v50 = vpop.eup %2661  ;;  %v1792_v63 = vrot.slane %v1693_v44, %v3315_v31  ;;  %v1812_v2 = vrot.slane %v1693_v44, %v3331_v38 }
 0x5bd   : > { %v1779_v51 = vmul.f32 %v2662_v50, %v1454_v19  ;;  %v1822_v53 = vmul.f32 %v1788_v37, %v3364_v47  ;;  %v1826_v62 = vmul.f32 %v1804_v49, %v3389_v20  ;;  %v1821_v3 = vmul.f32 %v1784_v23, %v3370_v57 }
 0x5be   : > { %v1825_v8 = vmul.f32 %v1800_v56, %v3394_v1  ;;  %v1823_v17 = vmul.f32 %v1792_v63, %v3382_v10  ;;  %v1828_v57 = vmul.f32 %v1812_v2, %v3401_v42 }
 0x5bf   : > { %v1918_v58 = vrot.slane %v1779_v51, %v3307_v27  ;;  %v1895_v61 = vadd.f32 %v1843_v54, %v1822_v53  ;;  %v1934_v6 = vrot.slane %v1779_v51, %v3310_v28  ;;  %v1930_v47 = vrot.slane %v1779_v51, %v3346_v45 }
 0x5c0   : > { %v1808_v27 = vrot.slane %v1693_v44, %v3320_v33  ;;  %v1899_v13 = vadd.f32 %v1871_v7, %v1826_v62  ;;  %v1894_v26 = vadd.f32 %v1836_v24, %v1821_v3  ;;  %v1796_v28 = vrot.slane %v1693_v44, %v3325_v35 }
 0x5c1   : > { %v1952_v5 = vmul.f32 %v1918_v58, %v3367_v52  ;;  %v1903_v20 = vadd.f32 1e-06, %v1895_v61  ;;  %v1914_v52 = vrot.slane %v1779_v51, %v3221_v12  ;;  %v1956_v1 = vmul.f32 %v1934_v6, %v3392_v25 }
 0x5c2   : > { %v1955_v18 = vmul.f32 %v1930_v47, %v3397_v32  ;;  %v1942_v21 = vrot.slane %v1779_v51, %v3331_v38  ;;  %v1898_v40 = vadd.f32 %v1864_v16, %v1825_v8  ;;  %v1827_v9 = vmul.f32 %v1808_v27, %v3406_v48  ;;  %v1878_v48 = vpop.permute.xlu0 %1877 }
 0x5c3   : > { %v3485_v11 = vadd.f32 1e-06, %v1952_v5  ;;  %v1938_v10 = vrot.slane %v1779_v51, %v3320_v33  ;;  %v1951_v42 = vmul.f32 %v1914_v52, %v3375_v0  ;;  %v1907_v22 = vadd.f32 1e-06, %v1899_v13 }
 0x5c4   : > { %v1896_v12 = vadd.f32 %v1850_v4, %v1823_v17  ;;  %v1922_v24 = vrot.slane %v1779_v51, %v3315_v31  ;;  %v1902_v19 = vadd.f32 1e-06, %v1894_v26  ;;  %v1824_v25 = vmul.f32 %v1796_v28, %v3372_v59 }
 0x5c5   : > { %v1968_v45 = vadd.f32 %v3485_v11, %v1903_v20  ;;  %v1959_v34 = vadd.f32 1e-06, %v1951_v42  ;;  %v1926_v32 = vrot.slane %v1779_v51, %v3325_v35  ;;  %v3501_v38 = vadd.f32 1e-06, %v1956_v1 }
 0x5c6   : > { %v3503_v36 = vadd.f32 1e-06, %v1955_v18  ;;  %v1958_v33 = vmul.f32 %v1942_v21, %v3404_v46  ;;  %v1953_v0 = vmul.f32 %v1922_v24, %v3385_v14  ;;  %v1957_v4 = vmul.f32 %v1938_v10, %v3411_v55 }
 0x5c7   : > { %2663 = vrcp.f32 %v1968_v45  ;;  %v1967_v39 = vadd.f32 %v1959_v34, %v1902_v19  ;;  %v1897_v31 = vadd.f32 %v1857_v30, %v1824_v25  ;;  %v1954_v41 = vmul.f32 %v1926_v32, %v3379_v60 }
 0x5c8   : > { %v1906_v43 = vadd.f32 1e-06, %v1898_v40  ;;  %v1901_v44 = vadd.f32 %v1885_v29, %v1828_v57  ;;  %v1904_v59 = vadd.f32 1e-06, %v1896_v12  ;;  %v1961_v37 = vadd.f32 1e-06, %v1953_v0 }
 0x5c9   : > { %v1900_v35 = vadd.f32 %v1878_v48, %v1827_v9  ;;  %2665 = vrcp.f32 %v1967_v39  ;;  %v1905_v49 = vadd.f32 1e-06, %v1897_v31  ;;  %v1962_v50 = vadd.f32 1e-06, %v1954_v41 }
 0x5ca   : > { %v1972_v23 = vadd.f32 %v3501_v38, %v1907_v22  ;;  %v1966_v46 = vadd.f32 1e-06, %v1958_v33  ;;  %v1969_v51 = vadd.f32 %v1961_v37, %v1904_v59  ;;  %v1971_v14 = vadd.f32 %v3503_v36, %v1906_v43 }
 0x5cb   : > { %v1965_v53 = vadd.f32 1e-06, %v1957_v4  ;;  %v1970_v55 = vadd.f32 %v1962_v50, %v1905_v49  ;;  %v1909_v54 = vadd.f32 1e-06, %v1901_v44  ;;  %v1908_v30 = vadd.f32 1e-06, %v1900_v35 }
 0x5cc   : > { %2667 = vrcp.f32 %v1969_v51 }
 0x5cd   : > { %2669 = vrcp.f32 %v1970_v55  ;;  %v1974_v60 = vadd.f32 %v1966_v46, %v1909_v54  ;;  %v1973_v56 = vadd.f32 %v1965_v53, %v1908_v30 }
 0x5ce   : > { %2671 = vrcp.f32 %v1972_v23 }
 0x5cf   : > { %2673 = vrcp.f32 %v1971_v14 }
 0x5d0   : > { %2675 = vrcp.f32 %v1974_v60 }
 0x5d1   : > { %2677 = vrcp.f32 %v1973_v56 }
 0x5d4   : > { %v2664_v58 = vpop.eup %2663 }
 0x5d5   : > { %v1992_v61 = vmul.f32 %v2664_v58, %v1903_v20  ;;  %v2073_v57 = vmul.f32 %v2664_v58, %v3485_v11 }
 0x5d6   : > { %v2666_v62 = vpop.eup %2665 }
 0x5d7   : > { %2011 = vperm.xlu1 %2625, %v1992_v61   ;;  %v1991_v63 = vmul.f32 %v2666_v62, %v1902_v19  ;;  %v2072_v26 = vmul.f32 %v2666_v62, %v1959_v34 }
 0x5d9   : > { %v2668_v2 = vpop.eup %2667  ;;  %2008 = vperm.xlu0 %2624, %v1991_v63  }
 0x5da   : > { %v2670_v3 = vpop.eup %2669  ;;  %v1993_v6 = vmul.f32 %v2668_v2, %v1904_v59  ;;  %v2074_v28 = vmul.f32 %v2668_v2, %v1961_v37 }
 0x5db   : > { %v2672_v5 = vpop.eup %2671  ;;  %v1994_v47 = vmul.f32 %v2670_v3, %v1905_v49  ;;  %v2075_v52 = vmul.f32 %v2670_v3, %v1962_v50 }
 0x5dc   : > { %v2674_v7 = vpop.eup %2673  ;;  %v1996_v27 = vmul.f32 %v2672_v5, %v1907_v22  ;;  %v2077_v45 = vmul.f32 %v2672_v5, %v3501_v38 }
 0x5dd   : > { %2014 = vperm.xlu0 %2624, %v1993_v6   ;;  %2017 = vperm.xlu1 %2625, %v1994_v47   ;;  %v2676_v8 = vpop.eup %2675  ;;  %v1995_v13 = vmul.f32 %v2674_v7, %v1906_v43  ;;  %v2076_v1 = vmul.f32 %v2674_v7, %v3503_v36 }
 0x5de   : > { %v2678_v16 = vpop.eup %2677  ;;  %v1998_v20 = vmul.f32 %v2676_v8, %v1909_v54  ;;  %v2079_v18 = vmul.f32 %v2676_v8, %v1966_v46 }
 0x5df   : > { %v1997_v17 = vmul.f32 %v2678_v16, %v1908_v30  ;;  %v2078_v21 = vmul.f32 %v2678_v16, %v1965_v53 }
 0x5e1   : > { %2023 = vperm.xlu1 %2625, %v1996_v27   ;;  %2020 = vperm.xlu0 %2624, %v1995_v13  }
 0x5e5   : > { %2029 = vperm.xlu1 %2625, %v1998_v20   ;;  %2026 = vperm.xlu0 %2624, %v1997_v17  }
 0x5e9   : > { %2092 = vperm.xlu1 %2625, %v2073_v57   ;;  %2089 = vperm.xlu0 %2624, %v2072_v26  }
 0x5ed   : > { %2098 = vperm.xlu1 %2625, %v2075_v52   ;;  %2095 = vperm.xlu0 %2624, %v2074_v28  }
 0x5f1   : > { %2104 = vperm.xlu1 %2625, %v2077_v45   ;;  %2101 = vperm.xlu0 %2624, %v2076_v1  }
 0x5f5   : > { %2110 = vperm.xlu1 %2625, %v2079_v18   ;;  %2107 = vperm.xlu0 %2624, %v2078_v21  }
 0x652   : > { %v2012_v40 = vpop.permute.xlu1 %2011 }
 0x653   : > { %v2038_v11 = vrot.slane %v2012_v40, %v3426_v15 }
 0x654   : > { %v2009_v9 = vpop.permute.xlu0 %2008 }
 0x655   : > { %v2034_v10 = vrot.slane %v2009_v9, %v3426_v15 }
 0x657   : > { %v2063_v24 = vsel %vm1673_vm3, %v2038_v11, %v2034_v10 }
 0x658   : > { %v2018_v42 = vpop.permute.xlu1 %2017  ;;  %v2015_v22 = vpop.permute.xlu0 %2014 }
 0x659   : > { %v2042_v12 = vrot.slane %v2015_v22, %v3426_v15  ;;  %v2046_v29 = vrot.slane %v2018_v42, %v3426_v15 }
 0x65b   : > { %v2064_v19 = vsel %vm1675_vm4, %v2042_v12, %v2063_v24 }
 0x65c   : > { %v2024_v34 = vpop.permute.xlu1 %2023  ;;  %v2021_v25 = vpop.permute.xlu0 %2020  ;;  %v2065_v36 = vsel %vm1677_vm5, %v2046_v29, %v2064_v19 }
 0x65d   : > { %v2050_v32 = vrot.slane %v2021_v25, %v3426_v15  ;;  %v2054_v38 = vrot.slane %v2024_v34, %v3426_v15 }
 0x65f   : > { %v2066_v33 = vsel %vm1679_vm6, %v2050_v32, %v2065_v36 }
 0x660   : > { %v2030_v48 = vpop.permute.xlu1 %2029  ;;  %v2027_v0 = vpop.permute.xlu0 %2026  ;;  %v2067_v31 = vsel %vm1681_vm7, %v2054_v38, %v2066_v33 }
 0x661   : > { %v2062_v4 = vrot.slane %v2030_v48, %v3426_v15  ;;  %v2058_v39 = vrot.slane %v2027_v0, %v3426_v15 }
 0x663   : > { %v2068_v41 = vsel %vm1683_vm8, %v2058_v39, %v2067_v31 }
 0x664   : > { %v2069_v43 = vsel %vm1685_vm9, %v2062_v4, %v2068_v41  ;;  %v2093_v44 = vpop.permute.xlu1 %2092  ;;  %v2090_v59 = vpop.permute.xlu0 %2089 }
 0x665   : > { %2071 = vst.msk [vmem:[%s587_s22] sm:$0xff] %vm1174_vm1, %v2069_v43  ;;  %v2119_v37 = vrot.slane %v2093_v44, %v3426_v15  ;;  %v2115_v35 = vrot.slane %v2090_v59, %v3426_v15 }
 0x667   : > { %v2144_v46 = vsel %vm1673_vm3, %v2119_v37, %v2115_v35 }
 0x668   : > { %v2099_v49 = vpop.permute.xlu1 %2098  ;;  %v2096_v50 = vpop.permute.xlu0 %2095 }
 0x669   : > { %v2123_v23 = vrot.slane %v2096_v50, %v3426_v15  ;;  %v2127_v51 = vrot.slane %v2099_v49, %v3426_v15 }
 0x66b   : > { %v2145_v14 = vsel %vm1675_vm4, %v2123_v23, %v2144_v46 }
 0x66c   : > { %v2105_v53 = vpop.permute.xlu1 %2104  ;;  %v2102_v55 = vpop.permute.xlu0 %2101  ;;  %v2146_v60 = vsel %vm1677_vm5, %v2127_v51, %v2145_v14 }
 0x66d   : > { %v2131_v54 = vrot.slane %v2102_v55, %v3426_v15  ;;  %v2135_v30 = vrot.slane %v2105_v53, %v3426_v15 }
 0x66f   : > { %v2147_v56 = vsel %vm1679_vm6, %v2131_v54, %v2146_v60 }
 0x670   : > { %v2111_v58 = vpop.permute.xlu1 %2110  ;;  %v2108_v61 = vpop.permute.xlu0 %2107  ;;  %v2148_v2 = vsel %vm1681_vm7, %v2135_v30, %v2147_v56 }
 0x671   : > { %v2143_v62 = vrot.slane %v2111_v58, %v3426_v15  ;;  %v2139_v63 = vrot.slane %v2108_v61, %v3426_v15 }
 0x673   : > { %v2149_v3 = vsel %vm1683_vm8, %v2139_v63, %v2148_v2 }
 0x674   : > { %v2150_v5 = vsel %vm1685_vm9, %v2143_v62, %v2149_v3 }
 0x675   : > { %2400 = vst.msk [vmem:[%s587_s22 + $0x8] sm:$0xff] %vm1174_vm1, %v2150_v5 }
 0x676   : > { %2852 = shalt.err (!%p2849_p6)
}
 0x677   : > { %s2853_s26 = scalar_lea.hbm %s3549_s4, 256  ;;  %s2857_s13 = scalar_lea.hbm %s3648_s25, 512 }
 0x678   : > { %p2854_p8 = scmp.ne.s32.totalorder %s3549_s4, %s2853_s26  ;;  %p2858_p2 = scmp.lt.s32.totalorder %s3549_s4, %s3648_s25 }
 0x679   : > { %p2859_p3 = scmp.lt.s32.totalorder %s2857_s13, %s2853_s26 }
 0x67a   : > { %p2855_p11 = pnand %p2854_p8, %p3133_p5 }
 0x67b   : > { %p2860_p1 = por %p2859_p3, %p2858_p2 }
 0x67c   : > { %p2856_p13 = pneg %p2855_p11 }
 0x67e   : > { %p2861_p12 = pnand %p2860_p1, %p2856_p13 }
 0x680   : > { %2864 = shalt.err (!%p2861_p12)
}
 0x681   : > { %s2949_s3 = smov 128   ;;  %s2950_s22 = smov 8  }
 0x682   : > { %2529 = dma.vmem_to_hbm [thread:$0]  (%p3133_p5), %s3551_s6, 256, %s3549_s4, %s2155_s30, %s2949_s3, %s2949_s3, %s2950_s22  }
 0x683 PF: > { %s2184_s15 = sand.u32 1, %s2915_s27   ;;  %p3650_p7 = scmp.ge.s32.totalorder %s2935_s12, 2 }
 0x684   : > { %s2185_s24 = scalar_lea.sflag [#allocation5], %s2184_s15 }
 0x685   : > { %p2552_p4 = pnand %p3650_p7, %p3140_p0 }
 0x687   : > { %p2553_p9 = pneg %p2552_p4 }
 0x689   : > { %2910 = dma.done.wait (%p2553_p9), %s2185_s24, 256  }
 0x68a   : > { %2912 = vsyncadd (%p2553_p9), %s2185_s24, 4294967040  ;;  %s36_s12 = sadd.s32 1, %s2935_s12   ;;  %s3651_s1 = sld [smem:[#allocation21_spill]] }
 0x68b   : > { %p33_p10 = scmp.ge.s32.totalorder %s36_s12, 4   ;;  %s3652_s29 = sld [smem:[#allocation23_spill]] }
 0x68c   : > { %s3653_s21 = sld [smem:[#allocation22_spill]]  ;;  %s3654_s27 = smov %s2919_s28 }
 0x68d   : > { %s3656_s30 = smov %s2931_s14 }
 0x68e   :  { %35 = sbr.rel (!%p33_p10) target bundleno = 18 (0x12), region = 151 }
 0x690   : > { %s3655_s28 = smov %s3651_s1 }
 0x692   : > { %s3657_s14 = smov %s3653_s21 }
 0x693   :  { %2190 = vsyncpa [#allocation4], 1 }
 0x694   :  { %2192 = vsyncpa [#allocation4 + $0x1], 1 }
 0x695   :  { %2193 = vsyncpa [#allocation7], 1 }
 0x696   :  { %2195 = vsyncpa [#allocation7 + $0x1], 1 }
 0x697   :  { %2196 = vsyncpa [#allocation10], 1 }
 0x698   :  { %2197 = vsyncpa [#allocation13], 1 }
 0x699   :  { %2198 = vsyncpa [#allocation5], 1 }
 0x69a   :  { %2200 = vsyncpa [#allocation5 + $0x1], 1 }

</bundles_post_ra>
